<compile_context>
chip_gen: v6e
topology: v6e:2x2x1
jax: 0.10.0
libtpu: 0.0.40
codegen_flags: <defaults>
</compile_context>

<pallas_src>
import functools

import jax
import jax.numpy as jnp
from jax import lax
from jax.experimental import pallas as pl
from jax.experimental.pallas import tpu as pltpu


# ----------------------------- kernel -----------------------------
def _fused_rnn_kernel(x_ref, lm1_ref,
                      wa0_ref, b0_ref,
                      wih_ref, whh_ref, bias_ref,
                      w1_ref, b1_ref, w2_ref, b2_ref,
                      out_ref, *, T, B, E2, C, L):
    """Lane-packed (demand | supply) fused forward.

    Ref shapes (2E = packed embed, 2H = packed hidden, 2C = packed classes):
      x_ref   : (T, B, 2E)  lane-replicated scalar input, time-major
      lm1_ref : (B, 1)      int32, values l-1 (shared across streams)
      wa0_ref : (1, 2E)     amplifier folded into layer-0 input projection
      b0_ref  : (1, 2E)     folded layer-0 bias (ba@Wih0 + bih0 + bhh0)
      wih_ref : (L, 2E, 2E) block-diag W_ih^T per layer  ([0] unused)
      whh_ref : (L, 2E, 2E) block-diag W_hh^T per layer
      bias_ref: (L, 1, 2E)  bih+bhh per layer            ([0] unused)
      w1_ref  : (2E, 2H), b1_ref: (1, 2H)
      w2_ref  : (2H, 2C), b2_ref: (1, 2C)
      out_ref : (B, 2C)     [log_softmax(demand) | log_softmax(supply)]
    """
    lm1 = lm1_ref[...]                                   # (B, 1) int32
    wa0 = wa0_ref[...]                                   # (1, 2E)
    b0 = b0_ref[...]                                     # (1, 2E)

    whh = [whh_ref[layer] for layer in range(L)]         # (2E, 2E) each
    wih = [wih_ref[layer] for layer in range(1, L)]      # layers >= 1
    bias = [bias_ref[layer] for layer in range(1, L)]

    h = [None] * L
    last = jnp.zeros((B, E2), jnp.float32)

    # ---- wavefront multi-layer tanh RNN (h0 = 0), gather fused in ----
    # TODO(synk): rows with l < 1 or l > T keep `last` = 0 here; only valid
    #             for 1 <= l <= T (PyTorch's gather assumes the same).
    for t in range(T):                                   # fully unrolled, T small
        pre0 = x_ref[t] * wa0 + b0                       # (B, 2E), off critical path
        if t == 0:
            h[0] = jnp.tanh(pre0)                        # h_{-1} == 0
        else:
            h[0] = jnp.tanh(pre0 + jnp.dot(h[0], whh[0],
                                           preferred_element_type=jnp.float32))
        for layer in range(1, L):                        # per-step input projection
            inp = jnp.dot(h[layer - 1], wih[layer - 1],
                          preferred_element_type=jnp.float32) + bias[layer - 1]
            if t == 0:
                h[layer] = jnp.tanh(inp)
            else:
                h[layer] = jnp.tanh(inp + jnp.dot(h[layer], whh[layer],
                                                  preferred_element_type=jnp.float32))
        last = jnp.where(lm1 == t, h[L - 1], last)       # gather at timestep l-1

    # ---- decoder: Linear -> (Dropout=id) -> ReLU -> Linear -> log_softmax ----
    z1 = jnp.maximum(
        jnp.dot(last, w1_ref[...], preferred_element_type=jnp.float32) + b1_ref[...],
        0.0)                                                                   # (B, 2H)
    z2 = jnp.dot(z1, w2_ref[...], preferred_element_type=jnp.float32) + b2_ref[...]  # (B, 2C)

    def _log_softmax(z):
        s = z - jnp.max(z, axis=-1, keepdims=True)
        return s - jnp.log(jnp.sum(jnp.exp(s), axis=-1, keepdims=True))

    # per-stream log_softmax (streams are packed along lanes), single lane-dense store
    out_ref[...] = jnp.concatenate(
        [_log_softmax(z2[:, :C]), _log_softmax(z2[:, C:])], axis=-1)


# ------------------ one-time weight packing (off hot path) ------------------
def _block_diag(a, b):
    ra, ca = a.shape
    rb, cb = b.shape
    top = jnp.concatenate([a, jnp.zeros((ra, cb), a.dtype)], axis=1)
    bot = jnp.concatenate([jnp.zeros((rb, ca), b.dtype), b], axis=1)
    return jnp.concatenate([top, bot], axis=0)


def pack_params(dp, sp):
    """Fold amplifier into layer-0, sum biases, block-diag pack the two streams.

    Pure weight transforms; call once (not per forward)."""
    L = dp["wih_t"].shape[0]

    def fold0(p):
        # (x*Wa + ba) @ Wih0 + bih0 + bhh0 == x*(Wa@Wih0) + (ba@Wih0 + bih0 + bhh0)
        wa_eff = p["wa_t"] @ p["wih_t"][0]                             # (1, E)
        b_eff = p["ba"] @ p["wih_t"][0] + p["bih"][0] + p["bhh"][0]    # (1, E)
        return wa_eff, b_eff

    wad, bd0 = fold0(dp)
    was, bs0 = fold0(sp)

    return dict(
        wa0=jnp.concatenate([wad, was], axis=1),                       # (1, 2E)
        b0=jnp.concatenate([bd0, bs0], axis=1),                        # (1, 2E)
        wih=jnp.stack([_block_diag(dp["wih_t"][l], sp["wih_t"][l])
                       for l in range(L)]),                            # (L, 2E, 2E), [0] unused
        whh=jnp.stack([_block_diag(dp["whh_t"][l], sp["whh_t"][l])
                       for l in range(L)]),                            # (L, 2E, 2E)
        bias=jnp.stack([jnp.concatenate([dp["bih"][l] + dp["bhh"][l],
                                         sp["bih"][l] + sp["bhh"][l]], axis=1)
                        for l in range(L)]),                           # (L, 1, 2E), [0] unused
        w1=_block_diag(dp["w1_t"], sp["w1_t"]),                        # (2E, 2H)
        b1=jnp.concatenate([dp["b1"], sp["b1"]], axis=1),              # (1, 2H)
        w2=_block_diag(dp["w2_t"], sp["w2_t"]),                        # (2H, 2C)
        b2=jnp.concatenate([dp["b2"], sp["b2"]], axis=1),              # (1, 2C)
    )


# ----------------------------- forward -----------------------------
@jax.jit
def base_rnn_forward_packed(d_x, s_x, l, packed):
    """Hot path: tiny input layout transform + one pallas_call (no grid)."""
    B, T = d_x.shape
    E2 = packed["wa0"].shape[1]
    E = E2 // 2
    C2 = packed["b2"].shape[1]
    C = C2 // 2
    L = packed["whh"].shape[0]

    # Lane-replicated time-major input: demand in lanes [:E], supply in [E:].
    x_rep = jnp.concatenate(
        [jnp.broadcast_to(d_x.T[:, :, None], (T, B, E)),
         jnp.broadcast_to(s_x.T[:, :, None], (T, B, E))],
        axis=-1).astype(jnp.float32)                                   # (T, B, 2E)
    lm1 = (l.astype(jnp.int32) - 1).reshape(B, 1)

    kernel = functools.partial(_fused_rnn_kernel, T=T, B=B, E2=E2, C=C, L=L)
    out = pl.pallas_call(
        kernel,
        out_shape=jax.ShapeDtypeStruct((B, C2), jnp.float32),
        # no grid: single invocation, whole arrays resident in VMEM (tens of KiB)
    )(x_rep, lm1,
      packed["wa0"], packed["b0"],
      packed["wih"], packed["whh"], packed["bias"],
      packed["w1"], packed["b1"], packed["w2"], packed["b2"])

    return out[:, :C], out[:, C:]


def base_rnn_model_forward(x, l, demand_params, supply_params):
    """BaseRNNModel.forward compatibility wrapper (packs weights per call)."""
    d_x, s_x = x
    packed = pack_params(demand_params, supply_params)
    return base_rnn_forward_packed(d_x, s_x, l, packed)


# ---------------- pure-JAX reference (for correctness check) ----------------
def _ref_stream(x, l, p):
    B, T = x.shape
    E = p["wa_t"].shape[1]
    h = x[:, :, None] * p["wa_t"][0][None, None, :] + p["ba"][0]       # (B, T, E)
    L = p["wih_t"].shape[0]
    for layer in range(L):
        def step(hprev, xt):
            hn = jnp.tanh(xt @ p["wih_t"][layer] + hprev @ p["whh_t"][layer]
                          + p["bih"][layer, 0] + p["bhh"][layer, 0])
            return hn, hn
        _, ys = lax.scan(step, jnp.zeros((B, E), jnp.float32),
                         jnp.transpose(h, (1, 0, 2)))
        h = jnp.transpose(ys, (1, 0, 2))
    last = h[jnp.arange(B), l - 1]
    z1 = jnp.maximum(last @ p["w1_t"] + p["b1"][0], 0.0)
    z2 = z1 @ p["w2_t"] + p["b2"][0]
    return jax.nn.log_softmax(z2, axis=-1)


# ---------------- deterministic parameter construction ----------------
def make_params(key, embed_dim, rnn_layer_num, hidden_dim, class_num):
    ks = jax.random.split(key, 10)
    scale = 0.2
    # amplifier Linear(1, E): weight (E, 1), bias (E,) -> store transposed (1, E)
    wa_t = scale * jax.random.normal(ks[0], (1, embed_dim), jnp.float32)
    ba = scale * jax.random.normal(ks[1], (1, embed_dim), jnp.float32)
    # RNN per layer: W_ih (E, E), W_hh (E, E), b_ih (E,), b_hh (E,) -> transposed mats
    wih_t = scale * jax.random.normal(ks[2], (rnn_layer_num, embed_dim, embed_dim), jnp.float32)
    whh_t = scale * jax.random.normal(ks[3], (rnn_layer_num, embed_dim, embed_dim), jnp.float32)
    bih = scale * jax.random.normal(ks[4], (rnn_layer_num, 1, embed_dim), jnp.float32)
    bhh = scale * jax.random.normal(ks[5], (rnn_layer_num, 1, embed_dim), jnp.float32)
    # decoder: Linear(E, H), Linear(H, C) -> transposed
    w1_t = scale * jax.random.normal(ks[6], (embed_dim, hidden_dim), jnp.float32)
    b1 = scale * jax.random.normal(ks[7], (1, hidden_dim), jnp.float32)
    w2_t = scale * jax.random.normal(ks[8], (hidden_dim, class_num), jnp.float32)
    b2 = scale * jax.random.normal(ks[9], (1, class_num), jnp.float32)
    return dict(wa_t=wa_t, ba=ba, wih_t=wih_t, whh_t=whh_t, bih=bih, bhh=bhh,
                w1_t=w1_t, b1=b1, w2_t=w2_t, b2=b2)


if __name__ == "__main__":
    # Small shapes consistent with the module's forward.
    B, T = 2, 8
    embed_dim = 32
    rnn_layer_num = 2
    hidden_dim = 32
    class_num = 4

    key = jax.random.PRNGKey(0)
    k_dx, k_sx, k_dp, k_sp = jax.random.split(key, 4)

    d_x = jax.random.normal(k_dx, (B, T), jnp.float32)
    s_x = jax.random.normal(k_sx, (B, T), jnp.float32)
    l = jnp.array([T, 5], dtype=jnp.int32)          # valid lengths per batch row

    demand_params = make_params(k_dp, embed_dim, rnn_layer_num, hidden_dim, class_num)
    supply_params = make_params(k_sp, embed_dim, rnn_layer_num, hidden_dim, class_num)

    # Weight packing is done ONCE, off the per-call hot path.
    packed = pack_params(demand_params, supply_params)

    d_y, s_y = base_rnn_forward_packed(d_x, s_x, l, packed)
    d_y, s_y = jax.block_until_ready((d_y, s_y))

    # Correctness check against pure-JAX reference.
    d_ref = _ref_stream(d_x, l, demand_params)
    s_ref = _ref_stream(s_x, l, supply_params)
    assert d_y.shape == (B, class_num) and s_y.shape == (B, class_num)
    assert jnp.allclose(d_y, d_ref, atol=1e-4, rtol=1e-4)
    assert jnp.allclose(s_y, s_ref, atol=1e-4, rtol=1e-4)

    print("KERNEL_OK")
</pallas_src>

<mosaic_0001>
module attributes {stable_mosaic.version = 11 : i64} {
  func.func @_fused_rnn_kernel(%arg0: memref<8x2x64xf32, #tpu.memory_space<vmem>>, %arg1: memref<2x1xi32, #tpu.memory_space<vmem>>, %arg2: memref<1x64xf32, #tpu.memory_space<vmem>>, %arg3: memref<1x64xf32, #tpu.memory_space<vmem>>, %arg4: memref<2x64x64xf32, #tpu.memory_space<vmem>>, %arg5: memref<2x64x64xf32, #tpu.memory_space<vmem>>, %arg6: memref<2x1x64xf32, #tpu.memory_space<vmem>>, %arg7: memref<64x64xf32, #tpu.memory_space<vmem>>, %arg8: memref<1x64xf32, #tpu.memory_space<vmem>>, %arg9: memref<64x8xf32, #tpu.memory_space<vmem>>, %arg10: memref<1x8xf32, #tpu.memory_space<vmem>>, %arg11: memref<2x8xf32, #tpu.memory_space<vmem>>) attributes {dimension_semantics = [], scalar_prefetch = 0 : i64, scratch_operands = 0 : i64, tpu.core_type = #tpu.core_type<tc>} {
    %c0 = arith.constant 0 : index
    %c0_0 = arith.constant 0 : index
    %0 = vector.load %arg1[%c0, %c0_0] : memref<2x1xi32, #tpu.memory_space<vmem>>, vector<2x1xi32>
    %c0_1 = arith.constant 0 : index
    %c0_2 = arith.constant 0 : index
    %1 = vector.load %arg2[%c0_1, %c0_2] : memref<1x64xf32, #tpu.memory_space<vmem>>, vector<1x64xf32>
    %c0_3 = arith.constant 0 : index
    %c0_4 = arith.constant 0 : index
    %2 = vector.load %arg3[%c0_3, %c0_4] : memref<1x64xf32, #tpu.memory_space<vmem>>, vector<1x64xf32>
    %c0_5 = arith.constant 0 : index
    %c0_6 = arith.constant 0 : index
    %c0_7 = arith.constant 0 : index
    %3 = vector.load %arg5[%c0_5, %c0_6, %c0_7] : memref<2x64x64xf32, #tpu.memory_space<vmem>>, vector<1x64x64xf32>
    %4 = vector.shape_cast %3 : vector<1x64x64xf32> to vector<64x64xf32>
    %c1 = arith.constant 1 : index
    %c0_8 = arith.constant 0 : index
    %c0_9 = arith.constant 0 : index
    %5 = vector.load %arg5[%c1, %c0_8, %c0_9] : memref<2x64x64xf32, #tpu.memory_space<vmem>>, vector<1x64x64xf32>
    %6 = vector.shape_cast %5 : vector<1x64x64xf32> to vector<64x64xf32>
    %c1_10 = arith.constant 1 : index
    %c0_11 = arith.constant 0 : index
    %c0_12 = arith.constant 0 : index
    %7 = vector.load %arg4[%c1_10, %c0_11, %c0_12] : memref<2x64x64xf32, #tpu.memory_space<vmem>>, vector<1x64x64xf32>
    %8 = vector.shape_cast %7 : vector<1x64x64xf32> to vector<64x64xf32>
    %c1_13 = arith.constant 1 : index
    %c0_14 = arith.constant 0 : index
    %c0_15 = arith.constant 0 : index
    %9 = vector.load %arg6[%c1_13, %c0_14, %c0_15] : memref<2x1x64xf32, #tpu.memory_space<vmem>>, vector<1x1x64xf32>
    %10 = vector.shape_cast %9 : vector<1x1x64xf32> to vector<1x64xf32>
    %cst = arith.constant 0.000000e+00 : f32
    %11 = vector.broadcast %cst : f32 to vector<2x64xf32>
    %c0_16 = arith.constant 0 : index
    %c0_17 = arith.constant 0 : index
    %c0_18 = arith.constant 0 : index
    %12 = vector.load %arg0[%c0_16, %c0_17, %c0_18] : memref<8x2x64xf32, #tpu.memory_space<vmem>>, vector<1x2x64xf32>
    %13 = vector.shape_cast %12 : vector<1x2x64xf32> to vector<2x64xf32>
    %14 = vector.broadcast %1 : vector<1x64xf32> to vector<2x64xf32>
    %15 = arith.mulf %13, %14 : vector<2x64xf32>
    %16 = vector.broadcast %2 : vector<1x64xf32> to vector<2x64xf32>
    %17 = arith.addf %15, %16 : vector<2x64xf32>
    %18 = math.tanh %17 : vector<2x64xf32>
    %cst_19 = arith.constant dense<0.000000e+00> : vector<2x64xf32>
    %19 = tpu.matmul %18, %8, %cst_19 {dimension_numbers = #tpu.dot_dimension_numbers<[1], [0], [0], [1], [0, 0, 1, 1], [], []>} : vector<2x64xf32>, vector<64x64xf32>, vector<2x64xf32> -> vector<2x64xf32>
    %20 = vector.broadcast %10 : vector<1x64xf32> to vector<2x64xf32>
    %21 = arith.addf %19, %20 : vector<2x64xf32>
    %22 = math.tanh %21 : vector<2x64xf32>
    %c0_i32 = arith.constant 0 : i32
    %23 = vector.broadcast %c0_i32 : i32 to vector<2x1xi32>
    %24 = arith.cmpi eq, %0, %23 : vector<2x1xi32>
    %25 = vector.shape_cast %24 : vector<2x1xi1> to vector<2x1xi1>
    %26 = vector.broadcast %25 : vector<2x1xi1> to vector<2x64xi1>
    %27 = arith.select %26, %22, %11 : vector<2x64xi1>, vector<2x64xf32>
    %c1_20 = arith.constant 1 : index
    %c0_21 = arith.constant 0 : index
    %c0_22 = arith.constant 0 : index
    %28 = vector.load %arg0[%c1_20, %c0_21, %c0_22] : memref<8x2x64xf32, #tpu.memory_space<vmem>>, vector<1x2x64xf32>
    %29 = vector.shape_cast %28 : vector<1x2x64xf32> to vector<2x64xf32>
    %30 = vector.broadcast %1 : vector<1x64xf32> to vector<2x64xf32>
    %31 = arith.mulf %29, %30 : vector<2x64xf32>
    %32 = vector.broadcast %2 : vector<1x64xf32> to vector<2x64xf32>
    %33 = arith.addf %31, %32 : vector<2x64xf32>
    %cst_23 = arith.constant dense<0.000000e+00> : vector<2x64xf32>
    %34 = tpu.matmul %18, %4, %cst_23 {dimension_numbers = #tpu.dot_dimension_numbers<[1], [0], [0], [1], [0, 0, 1, 1], [], []>} : vector<2x64xf32>, vector<64x64xf32>, vector<2x64xf32> -> vector<2x64xf32>
    %35 = arith.addf %33, %34 : vector<2x64xf32>
    %36 = math.tanh %35 : vector<2x64xf32>
    %cst_24 = arith.constant dense<0.000000e+00> : vector<2x64xf32>
    %37 = tpu.matmul %36, %8, %cst_24 {dimension_numbers = #tpu.dot_dimension_numbers<[1], [0], [0], [1], [0, 0, 1, 1], [], []>} : vector<2x64xf32>, vector<64x64xf32>, vector<2x64xf32> -> vector<2x64xf32>
    %38 = vector.broadcast %10 : vector<1x64xf32> to vector<2x64xf32>
    %39 = arith.addf %37, %38 : vector<2x64xf32>
    %cst_25 = arith.constant dense<0.000000e+00> : vector<2x64xf32>
    %40 = tpu.matmul %22, %6, %cst_25 {dimension_numbers = #tpu.dot_dimension_numbers<[1], [0], [0], [1], [0, 0, 1, 1], [], []>} : vector<2x64xf32>, vector<64x64xf32>, vector<2x64xf32> -> vector<2x64xf32>
    %41 = arith.addf %39, %40 : vector<2x64xf32>
    %42 = math.tanh %41 : vector<2x64xf32>
    %c1_i32 = arith.constant 1 : i32
    %43 = vector.broadcast %c1_i32 : i32 to vector<2x1xi32>
    %44 = arith.cmpi eq, %0, %43 : vector<2x1xi32>
    %45 = vector.shape_cast %44 : vector<2x1xi1> to vector<2x1xi1>
    %46 = vector.broadcast %45 : vector<2x1xi1> to vector<2x64xi1>
    %47 = arith.select %46, %42, %27 : vector<2x64xi1>, vector<2x64xf32>
    %c2 = arith.constant 2 : index
    %c0_26 = arith.constant 0 : index
    %c0_27 = arith.constant 0 : index
    %48 = vector.load %arg0[%c2, %c0_26, %c0_27] : memref<8x2x64xf32, #tpu.memory_space<vmem>>, vector<1x2x64xf32>
    %49 = vector.shape_cast %48 : vector<1x2x64xf32> to vector<2x64xf32>
    %50 = vector.broadcast %1 : vector<1x64xf32> to vector<2x64xf32>
    %51 = arith.mulf %49, %50 : vector<2x64xf32>
    %52 = vector.broadcast %2 : vector<1x64xf32> to vector<2x64xf32>
    %53 = arith.addf %51, %52 : vector<2x64xf32>
    %cst_28 = arith.constant dense<0.000000e+00> : vector<2x64xf32>
    %54 = tpu.matmul %36, %4, %cst_28 {dimension_numbers = #tpu.dot_dimension_numbers<[1], [0], [0], [1], [0, 0, 1, 1], [], []>} : vector<2x64xf32>, vector<64x64xf32>, vector<2x64xf32> -> vector<2x64xf32>
    %55 = arith.addf %53, %54 : vector<2x64xf32>
    %56 = math.tanh %55 : vector<2x64xf32>
    %cst_29 = arith.constant dense<0.000000e+00> : vector<2x64xf32>
    %57 = tpu.matmul %56, %8, %cst_29 {dimension_numbers = #tpu.dot_dimension_numbers<[1], [0], [0], [1], [0, 0, 1, 1], [], []>} : vector<2x64xf32>, vector<64x64xf32>, vector<2x64xf32> -> vector<2x64xf32>
    %58 = vector.broadcast %10 : vector<1x64xf32> to vector<2x64xf32>
    %59 = arith.addf %57, %58 : vector<2x64xf32>
    %cst_30 = arith.constant dense<0.000000e+00> : vector<2x64xf32>
    %60 = tpu.matmul %42, %6, %cst_30 {dimension_numbers = #tpu.dot_dimension_numbers<[1], [0], [0], [1], [0, 0, 1, 1], [], []>} : vector<2x64xf32>, vector<64x64xf32>, vector<2x64xf32> -> vector<2x64xf32>
    %61 = arith.addf %59, %60 : vector<2x64xf32>
    %62 = math.tanh %61 : vector<2x64xf32>
    %c2_i32 = arith.constant 2 : i32
    %63 = vector.broadcast %c2_i32 : i32 to vector<2x1xi32>
    %64 = arith.cmpi eq, %0, %63 : vector<2x1xi32>
    %65 = vector.shape_cast %64 : vector<2x1xi1> to vector<2x1xi1>
    %66 = vector.broadcast %65 : vector<2x1xi1> to vector<2x64xi1>
    %67 = arith.select %66, %62, %47 : vector<2x64xi1>, vector<2x64xf32>
    %c3 = arith.constant 3 : index
    %c0_31 = arith.constant 0 : index
    %c0_32 = arith.constant 0 : index
    %68 = vector.load %arg0[%c3, %c0_31, %c0_32] : memref<8x2x64xf32, #tpu.memory_space<vmem>>, vector<1x2x64xf32>
    %69 = vector.shape_cast %68 : vector<1x2x64xf32> to vector<2x64xf32>
    %70 = vector.broadcast %1 : vector<1x64xf32> to vector<2x64xf32>
    %71 = arith.mulf %69, %70 : vector<2x64xf32>
    %72 = vector.broadcast %2 : vector<1x64xf32> to vector<2x64xf32>
    %73 = arith.addf %71, %72 : vector<2x64xf32>
    %cst_33 = arith.constant dense<0.000000e+00> : vector<2x64xf32>
    %74 = tpu.matmul %56, %4, %cst_33 {dimension_numbers = #tpu.dot_dimension_numbers<[1], [0], [0], [1], [0, 0, 1, 1], [], []>} : vector<2x64xf32>, vector<64x64xf32>, vector<2x64xf32> -> vector<2x64xf32>
    %75 = arith.addf %73, %74 : vector<2x64xf32>
    %76 = math.tanh %75 : vector<2x64xf32>
    %cst_34 = arith.constant dense<0.000000e+00> : vector<2x64xf32>
    %77 = tpu.matmul %76, %8, %cst_34 {dimension_numbers = #tpu.dot_dimension_numbers<[1], [0], [0], [1], [0, 0, 1, 1], [], []>} : vector<2x64xf32>, vector<64x64xf32>, vector<2x64xf32> -> vector<2x64xf32>
    %78 = vector.broadcast %10 : vector<1x64xf32> to vector<2x64xf32>
    %79 = arith.addf %77, %78 : vector<2x64xf32>
    %cst_35 = arith.constant dense<0.000000e+00> : vector<2x64xf32>
    %80 = tpu.matmul %62, %6, %cst_35 {dimension_numbers = #tpu.dot_dimension_numbers<[1], [0], [0], [1], [0, 0, 1, 1], [], []>} : vector<2x64xf32>, vector<64x64xf32>, vector<2x64xf32> -> vector<2x64xf32>
    %81 = arith.addf %79, %80 : vector<2x64xf32>
    %82 = math.tanh %81 : vector<2x64xf32>
    %c3_i32 = arith.constant 3 : i32
    %83 = vector.broadcast %c3_i32 : i32 to vector<2x1xi32>
    %84 = arith.cmpi eq, %0, %83 : vector<2x1xi32>
    %85 = vector.shape_cast %84 : vector<2x1xi1> to vector<2x1xi1>
    %86 = vector.broadcast %85 : vector<2x1xi1> to vector<2x64xi1>
    %87 = arith.select %86, %82, %67 : vector<2x64xi1>, vector<2x64xf32>
    %c4 = arith.constant 4 : index
    %c0_36 = arith.constant 0 : index
    %c0_37 = arith.constant 0 : index
    %88 = vector.load %arg0[%c4, %c0_36, %c0_37] : memref<8x2x64xf32, #tpu.memory_space<vmem>>, vector<1x2x64xf32>
    %89 = vector.shape_cast %88 : vector<1x2x64xf32> to vector<2x64xf32>
    %90 = vector.broadcast %1 : vector<1x64xf32> to vector<2x64xf32>
    %91 = arith.mulf %89, %90 : vector<2x64xf32>
    %92 = vector.broadcast %2 : vector<1x64xf32> to vector<2x64xf32>
    %93 = arith.addf %91, %92 : vector<2x64xf32>
    %cst_38 = arith.constant dense<0.000000e+00> : vector<2x64xf32>
    %94 = tpu.matmul %76, %4, %cst_38 {dimension_numbers = #tpu.dot_dimension_numbers<[1], [0], [0], [1], [0, 0, 1, 1], [], []>} : vector<2x64xf32>, vector<64x64xf32>, vector<2x64xf32> -> vector<2x64xf32>
    %95 = arith.addf %93, %94 : vector<2x64xf32>
    %96 = math.tanh %95 : vector<2x64xf32>
    %cst_39 = arith.constant dense<0.000000e+00> : vector<2x64xf32>
    %97 = tpu.matmul %96, %8, %cst_39 {dimension_numbers = #tpu.dot_dimension_numbers<[1], [0], [0], [1], [0, 0, 1, 1], [], []>} : vector<2x64xf32>, vector<64x64xf32>, vector<2x64xf32> -> vector<2x64xf32>
    %98 = vector.broadcast %10 : vector<1x64xf32> to vector<2x64xf32>
    %99 = arith.addf %97, %98 : vector<2x64xf32>
    %cst_40 = arith.constant dense<0.000000e+00> : vector<2x64xf32>
    %100 = tpu.matmul %82, %6, %cst_40 {dimension_numbers = #tpu.dot_dimension_numbers<[1], [0], [0], [1], [0, 0, 1, 1], [], []>} : vector<2x64xf32>, vector<64x64xf32>, vector<2x64xf32> -> vector<2x64xf32>
    %101 = arith.addf %99, %100 : vector<2x64xf32>
    %102 = math.tanh %101 : vector<2x64xf32>
    %c4_i32 = arith.constant 4 : i32
    %103 = vector.broadcast %c4_i32 : i32 to vector<2x1xi32>
    %104 = arith.cmpi eq, %0, %103 : vector<2x1xi32>
    %105 = vector.shape_cast %104 : vector<2x1xi1> to vector<2x1xi1>
    %106 = vector.broadcast %105 : vector<2x1xi1> to vector<2x64xi1>
    %107 = arith.select %106, %102, %87 : vector<2x64xi1>, vector<2x64xf32>
    %c5 = arith.constant 5 : index
    %c0_41 = arith.constant 0 : index
    %c0_42 = arith.constant 0 : index
    %108 = vector.load %arg0[%c5, %c0_41, %c0_42] : memref<8x2x64xf32, #tpu.memory_space<vmem>>, vector<1x2x64xf32>
    %109 = vector.shape_cast %108 : vector<1x2x64xf32> to vector<2x64xf32>
    %110 = vector.broadcast %1 : vector<1x64xf32> to vector<2x64xf32>
    %111 = arith.mulf %109, %110 : vector<2x64xf32>
    %112 = vector.broadcast %2 : vector<1x64xf32> to vector<2x64xf32>
    %113 = arith.addf %111, %112 : vector<2x64xf32>
    %cst_43 = arith.constant dense<0.000000e+00> : vector<2x64xf32>
    %114 = tpu.matmul %96, %4, %cst_43 {dimension_numbers = #tpu.dot_dimension_numbers<[1], [0], [0], [1], [0, 0, 1, 1], [], []>} : vector<2x64xf32>, vector<64x64xf32>, vector<2x64xf32> -> vector<2x64xf32>
    %115 = arith.addf %113, %114 : vector<2x64xf32>
    %116 = math.tanh %115 : vector<2x64xf32>
    %cst_44 = arith.constant dense<0.000000e+00> : vector<2x64xf32>
    %117 = tpu.matmul %116, %8, %cst_44 {dimension_numbers = #tpu.dot_dimension_numbers<[1], [0], [0], [1], [0, 0, 1, 1], [], []>} : vector<2x64xf32>, vector<64x64xf32>, vector<2x64xf32> -> vector<2x64xf32>
    %118 = vector.broadcast %10 : vector<1x64xf32> to vector<2x64xf32>
    %119 = arith.addf %117, %118 : vector<2x64xf32>
    %cst_45 = arith.constant dense<0.000000e+00> : vector<2x64xf32>
    %120 = tpu.matmul %102, %6, %cst_45 {dimension_numbers = #tpu.dot_dimension_numbers<[1], [0], [0], [1], [0, 0, 1, 1], [], []>} : vector<2x64xf32>, vector<64x64xf32>, vector<2x64xf32> -> vector<2x64xf32>
    %121 = arith.addf %119, %120 : vector<2x64xf32>
    %122 = math.tanh %121 : vector<2x64xf32>
    %c5_i32 = arith.constant 5 : i32
    %123 = vector.broadcast %c5_i32 : i32 to vector<2x1xi32>
    %124 = arith.cmpi eq, %0, %123 : vector<2x1xi32>
    %125 = vector.shape_cast %124 : vector<2x1xi1> to vector<2x1xi1>
    %126 = vector.broadcast %125 : vector<2x1xi1> to vector<2x64xi1>
    %127 = arith.select %126, %122, %107 : vector<2x64xi1>, vector<2x64xf32>
    %c6 = arith.constant 6 : index
    %c0_46 = arith.constant 0 : index
    %c0_47 = arith.constant 0 : index
    %128 = vector.load %arg0[%c6, %c0_46, %c0_47] : memref<8x2x64xf32, #tpu.memory_space<vmem>>, vector<1x2x64xf32>
    %129 = vector.shape_cast %128 : vector<1x2x64xf32> to vector<2x64xf32>
    %130 = vector.broadcast %1 : vector<1x64xf32> to vector<2x64xf32>
    %131 = arith.mulf %129, %130 : vector<2x64xf32>
    %132 = vector.broadcast %2 : vector<1x64xf32> to vector<2x64xf32>
    %133 = arith.addf %131, %132 : vector<2x64xf32>
    %cst_48 = arith.constant dense<0.000000e+00> : vector<2x64xf32>
    %134 = tpu.matmul %116, %4, %cst_48 {dimension_numbers = #tpu.dot_dimension_numbers<[1], [0], [0], [1], [0, 0, 1, 1], [], []>} : vector<2x64xf32>, vector<64x64xf32>, vector<2x64xf32> -> vector<2x64xf32>
    %135 = arith.addf %133, %134 : vector<2x64xf32>
    %136 = math.tanh %135 : vector<2x64xf32>
    %cst_49 = arith.constant dense<0.000000e+00> : vector<2x64xf32>
    %137 = tpu.matmul %136, %8, %cst_49 {dimension_numbers = #tpu.dot_dimension_numbers<[1], [0], [0], [1], [0, 0, 1, 1], [], []>} : vector<2x64xf32>, vector<64x64xf32>, vector<2x64xf32> -> vector<2x64xf32>
    %138 = vector.broadcast %10 : vector<1x64xf32> to vector<2x64xf32>
    %139 = arith.addf %137, %138 : vector<2x64xf32>
    %cst_50 = arith.constant dense<0.000000e+00> : vector<2x64xf32>
    %140 = tpu.matmul %122, %6, %cst_50 {dimension_numbers = #tpu.dot_dimension_numbers<[1], [0], [0], [1], [0, 0, 1, 1], [], []>} : vector<2x64xf32>, vector<64x64xf32>, vector<2x64xf32> -> vector<2x64xf32>
    %141 = arith.addf %139, %140 : vector<2x64xf32>
    %142 = math.tanh %141 : vector<2x64xf32>
    %c6_i32 = arith.constant 6 : i32
    %143 = vector.broadcast %c6_i32 : i32 to vector<2x1xi32>
    %144 = arith.cmpi eq, %0, %143 : vector<2x1xi32>
    %145 = vector.shape_cast %144 : vector<2x1xi1> to vector<2x1xi1>
    %146 = vector.broadcast %145 : vector<2x1xi1> to vector<2x64xi1>
    %147 = arith.select %146, %142, %127 : vector<2x64xi1>, vector<2x64xf32>
    %c7 = arith.constant 7 : index
    %c0_51 = arith.constant 0 : index
    %c0_52 = arith.constant 0 : index
    %148 = vector.load %arg0[%c7, %c0_51, %c0_52] : memref<8x2x64xf32, #tpu.memory_space<vmem>>, vector<1x2x64xf32>
    %149 = vector.shape_cast %148 : vector<1x2x64xf32> to vector<2x64xf32>
    %150 = vector.broadcast %1 : vector<1x64xf32> to vector<2x64xf32>
    %151 = arith.mulf %149, %150 : vector<2x64xf32>
    %152 = vector.broadcast %2 : vector<1x64xf32> to vector<2x64xf32>
    %153 = arith.addf %151, %152 : vector<2x64xf32>
    %cst_53 = arith.constant dense<0.000000e+00> : vector<2x64xf32>
    %154 = tpu.matmul %136, %4, %cst_53 {dimension_numbers = #tpu.dot_dimension_numbers<[1], [0], [0], [1], [0, 0, 1, 1], [], []>} : vector<2x64xf32>, vector<64x64xf32>, vector<2x64xf32> -> vector<2x64xf32>
    %155 = arith.addf %153, %154 : vector<2x64xf32>
    %156 = math.tanh %155 : vector<2x64xf32>
    %cst_54 = arith.constant dense<0.000000e+00> : vector<2x64xf32>
    %157 = tpu.matmul %156, %8, %cst_54 {dimension_numbers = #tpu.dot_dimension_numbers<[1], [0], [0], [1], [0, 0, 1, 1], [], []>} : vector<2x64xf32>, vector<64x64xf32>, vector<2x64xf32> -> vector<2x64xf32>
    %158 = vector.broadcast %10 : vector<1x64xf32> to vector<2x64xf32>
    %159 = arith.addf %157, %158 : vector<2x64xf32>
    %cst_55 = arith.constant dense<0.000000e+00> : vector<2x64xf32>
    %160 = tpu.matmul %142, %6, %cst_55 {dimension_numbers = #tpu.dot_dimension_numbers<[1], [0], [0], [1], [0, 0, 1, 1], [], []>} : vector<2x64xf32>, vector<64x64xf32>, vector<2x64xf32> -> vector<2x64xf32>
    %161 = arith.addf %159, %160 : vector<2x64xf32>
    %162 = math.tanh %161 : vector<2x64xf32>
    %c7_i32 = arith.constant 7 : i32
    %163 = vector.broadcast %c7_i32 : i32 to vector<2x1xi32>
    %164 = arith.cmpi eq, %0, %163 : vector<2x1xi32>
    %165 = vector.shape_cast %164 : vector<2x1xi1> to vector<2x1xi1>
    %166 = vector.broadcast %165 : vector<2x1xi1> to vector<2x64xi1>
    %167 = arith.select %166, %162, %147 : vector<2x64xi1>, vector<2x64xf32>
    %c0_56 = arith.constant 0 : index
    %c0_57 = arith.constant 0 : index
    %168 = vector.load %arg7[%c0_56, %c0_57] : memref<64x64xf32, #tpu.memory_space<vmem>>, vector<64x64xf32>
    %cst_58 = arith.constant dense<0.000000e+00> : vector<2x64xf32>
    %169 = tpu.matmul %167, %168, %cst_58 {dimension_numbers = #tpu.dot_dimension_numbers<[1], [0], [0], [1], [0, 0, 1, 1], [], []>} : vector<2x64xf32>, vector<64x64xf32>, vector<2x64xf32> -> vector<2x64xf32>
    %c0_59 = arith.constant 0 : index
    %c0_60 = arith.constant 0 : index
    %170 = vector.load %arg8[%c0_59, %c0_60] : memref<1x64xf32, #tpu.memory_space<vmem>>, vector<1x64xf32>
    %171 = vector.broadcast %170 : vector<1x64xf32> to vector<2x64xf32>
    %172 = arith.addf %169, %171 : vector<2x64xf32>
    %cst_61 = arith.constant 0.000000e+00 : f32
    %173 = vector.broadcast %cst_61 : f32 to vector<2x64xf32>
    %174 = arith.maximumf %172, %173 : vector<2x64xf32>
    %c0_62 = arith.constant 0 : index
    %c0_63 = arith.constant 0 : index
    %175 = vector.load %arg9[%c0_62, %c0_63] : memref<64x8xf32, #tpu.memory_space<vmem>>, vector<64x8xf32>
    %cst_64 = arith.constant dense<0.000000e+00> : vector<2x8xf32>
    %176 = tpu.matmul %174, %175, %cst_64 {dimension_numbers = #tpu.dot_dimension_numbers<[1], [0], [0], [1], [0, 0, 1, 1], [], []>} : vector<2x64xf32>, vector<64x8xf32>, vector<2x8xf32> -> vector<2x8xf32>
    %c0_65 = arith.constant 0 : index
    %c0_66 = arith.constant 0 : index
    %177 = vector.load %arg10[%c0_65, %c0_66] : memref<1x8xf32, #tpu.memory_space<vmem>>, vector<1x8xf32>
    %178 = vector.broadcast %177 : vector<1x8xf32> to vector<2x8xf32>
    %179 = arith.addf %176, %178 : vector<2x8xf32>
    %180 = vector.extract_strided_slice %179 {offsets = [0, 0], sizes = [2, 4], strides = [1, 1]} : vector<2x8xf32> to vector<2x4xf32>
    %cst_67 = arith.constant dense<0xFF800000> : vector<2xf32>
    %181 = vector.multi_reduction <maximumf>, %180, %cst_67 [1] : vector<2x4xf32> to vector<2xf32>
    %182 = vector.shape_cast %181 : vector<2xf32> to vector<2x1xf32>
    %183 = vector.broadcast %182 : vector<2x1xf32> to vector<2x4xf32>
    %184 = arith.subf %180, %183 : vector<2x4xf32>
    %185 = math.exp %184 : vector<2x4xf32>
    %cst_68 = arith.constant dense<0.000000e+00> : vector<2xf32>
    %186 = vector.multi_reduction <add>, %185, %cst_68 [1] : vector<2x4xf32> to vector<2xf32>
    %187 = vector.shape_cast %186 : vector<2xf32> to vector<2x1xf32>
    %188 = math.log %187 : vector<2x1xf32>
    %189 = vector.broadcast %188 : vector<2x1xf32> to vector<2x4xf32>
    %190 = arith.subf %184, %189 : vector<2x4xf32>
    %191 = vector.extract_strided_slice %179 {offsets = [0, 4], sizes = [2, 4], strides = [1, 1]} : vector<2x8xf32> to vector<2x4xf32>
    %cst_69 = arith.constant dense<0xFF800000> : vector<2xf32>
    %192 = vector.multi_reduction <maximumf>, %191, %cst_69 [1] : vector<2x4xf32> to vector<2xf32>
    %193 = vector.shape_cast %192 : vector<2xf32> to vector<2x1xf32>
    %194 = vector.broadcast %193 : vector<2x1xf32> to vector<2x4xf32>
    %195 = arith.subf %191, %194 : vector<2x4xf32>
    %196 = math.exp %195 : vector<2x4xf32>
    %cst_70 = arith.constant dense<0.000000e+00> : vector<2xf32>
    %197 = vector.multi_reduction <add>, %196, %cst_70 [1] : vector<2x4xf32> to vector<2xf32>
    %198 = vector.shape_cast %197 : vector<2xf32> to vector<2x1xf32>
    %199 = math.log %198 : vector<2x1xf32>
    %200 = vector.broadcast %199 : vector<2x1xf32> to vector<2x4xf32>
    %201 = arith.subf %195, %200 : vector<2x4xf32>
    %202 = tpu.concatenate %190, %201 in 1 : vector<2x4xf32>, vector<2x4xf32> -> vector<2x8xf32>
    %c0_71 = arith.constant 0 : index
    %c0_72 = arith.constant 0 : index
    %203 = vector.load %arg11[%c0_71, %c0_72] : memref<2x8xf32, #tpu.memory_space<vmem>>, vector<2x8xf32>
    tpu.vector_store %arg11[%c0_71, %c0_72], %202 {strides = array<i32>} : memref<2x8xf32, #tpu.memory_space<vmem>>, vector<2x8xf32>,
    return
  }
}

</mosaic_0001>

<bundles_post_ra>
// kernel: base_rnn_forward_packed.1
= control target key start
LH: loop header
LB: loop body
LE: loop exit
PB: predicated region body
PF: predicated region fallthrough
CT: control target
= control target key end

     0   :  { %16 = vsyncpa [#allocation3], 0  ;;  %s2816_s17 = smov [#allocation2]   ;;  %s3567_s0 = inlined_call_operand.vmem [shape: f32[8,2,64], index: 0, kind: input, shape index: {}]   ;;  %s3568_s1 = inlined_call_operand.vmem [shape: s32[2,1], index: 1, kind: input, shape index: {}]   ;;  %s3569_s2 = inlined_call_operand.vmem [shape: f32[1,64], index: 2, kind: input, shape index: {}]   ;;  %s3570_s3 = inlined_call_operand.vmem [shape: f32[1,64], index: 3, kind: input, shape index: {}]   ;;  %s3571_s4 = inlined_call_operand.vmem [shape: f32[2,64,64], index: 4, kind: input, shape index: {}]   ;;  %s3572_s5 = inlined_call_operand.hbm [shape: f32[2,64,64], index: 5, kind: input, shape index: {}]   ;;  %s3573_s6 = inlined_call_operand.vmem [shape: f32[2,1,64], index: 6, kind: input, shape index: {}]   ;;  %s3574_s7 = inlined_call_operand.vmem [shape: f32[64,64], index: 7, kind: input, shape index: {}]   ;;  %s3575_s8 = inlined_call_operand.vmem [shape: f32[1,64], index: 8, kind: input, shape index: {}]   ;;  %s3576_s9 = inlined_call_operand.vmem [shape: f32[64,8], index: 9, kind: input, shape index: {}]   ;;  %s3577_s10 = inlined_call_operand.vmem [shape: f32[1,8], index: 10, kind: input, shape index: {}]   ;;  %s3578_s11 = inlined_call_operand.vmem [shape: f32[2,8], index: 11, kind: output, shape index: {}]  }
   0x1   :  { %s32_s18 = sshll.u32 %s2816_s17, 4  ;;  %s33_s18 = int_to_ptr.vmem [resolvable:$true] %s32_s18 }
   0x2   :  { %s2802_s19 = scalar_lea.vmem %s33_s18, 2048  ;;  %p2807_p1 = scmp.lt.s32.totalorder %s33_s18, %s33_s18 }
   0x3   :  { %p2803_p0 = scmp.ne.s32.totalorder %s33_s18, %s2802_s19  ;;  %p2808_p2 = scmp.lt.s32.totalorder %s2802_s19, %s2802_s19 }
   0x5   :  { %p2809_p3 = por %p2808_p2, %p2807_p1 }
   0x7   :  { %p2810_p4 = pnand %p2809_p3, %p2803_p0 }
   0x9   :  { %2813 = shalt.err (!%p2810_p4)
}
   0xa   :  { %s2817_s20 = smov 128   ;;  %s2818_s21 = smov 8  }
   0xb   :  { %38 = dma.hbm_to_vmem [thread:$0]  %s3572_s5, 2048, %s33_s18, [#allocation3], %s2817_s20, %s2817_s20, %s2818_s21  }
   0xc   :  { %2814 = dma.done.wait [#allocation3], 2048  }
   0xd   :  { %2815 = vsyncadd [#allocation3], 4294965248  ;;  %v2819_v0 = vmov 0.0   ;;  %vm2820_vm0 = vmmov 0   ;;  %v2821_v1 = vmov 0   ;;  %v2894_v2 = vld [vmem:[#allocation2 + $0x38] sm:$0xff] }
   0xe   :  { %2300 = vmatprep.subr.mxu1 %v2819_v0  ;;  %2281 = vmatprep.subr.mxu0 %v2819_v0  ;;  %v2899_v3 = vld [vmem:[%s3571_s4 + $0x78] sm:$0xff]  ;;  %v2901_v4 = vld [vmem:[#allocation2 + $0x30] sm:$0xff]  ;;  %v2912_v6 = vld [vmem:[#allocation2 + $0x28] sm:$0xff]  ;;  %vm105_vm2 = vcmask 523264  }
   0xf   :  { %2316 = vmatprep.mubr.msk.f32.mxu1 %vm2820_vm0, %v2819_v0  ;;  %2297 = vmatprep.mubr.msk.f32.mxu0 %vm2820_vm0, %v2819_v0  ;;  %v2908_v5 = vld [vmem:[%s3571_s4 + $0x70] sm:$0xff]  ;;  %v2917_v7 = vld [vmem:[%s3571_s4 + $0x68] sm:$0xff]  ;;  %v2923_v8 = vld [vmem:[#allocation2 + $0x20] sm:$0xff] }
  0x10   :  { %2744 = vset.pattern.permute.xlu0 %v2821_v1  ;;  %2745 = vset.pattern.permute.xlu1 %v2821_v1  ;;  %v2928_v9 = vld [vmem:[%s3571_s4 + $0x60] sm:$0xff]  ;;  %v2947_v13 = vld [vmem:[#allocation2 + $0x18] sm:$0xff]  ;;  %v2964_v17 = vld [vmem:[#allocation2 + $0x10] sm:$0xff] }
  0x11   :  { %2301 = vmatpush3.msra.mxu1 %v2894_v2  ;;  %2282 = vmatpush3.msra.mxu0 %v2899_v3  ;;  %v2935_v10 = vld [vmem:[%s3569_s2] ss:$0 sm:$0xff]  ;;  %v2952_v14 = vld [vmem:[%s3571_s4 + $0x58] sm:$0xff]  ;;  %v2969_v18 = vld [vmem:[%s3571_s4 + $0x50] sm:$0xff] }
  0x12   :  { %2302 = vmatprep.subr.mxu1 %v2819_v0  ;;  %2283 = vmatprep.subr.mxu0 %v2819_v0  ;;  %v2940_v11 = vld [vmem:[%s3570_s3] ss:$0 sm:$0xff]  ;;  %v2976_v20 = vld [vmem:[#allocation2 + $0x8] sm:$0xff]  ;;  %v3026_v26 = vld [vmem:[#allocation2 + $0x78] sm:$0xff] }
  0x13   :  { %2303 = vmatpush3.msra.mxu1 %v2901_v4  ;;  %2284 = vmatpush3.msra.mxu0 %v2908_v5  ;;  %v83_v12 = vld [vmem:[%s3567_s0] sm:$0x3]  ;;  %v2981_v21 = vld [vmem:[%s3571_s4 + $0x48] sm:$0xff]  ;;  %v3029_v27 = vld [vmem:[#allocation2 + $0x70] sm:$0xff] }
  0x14   :  { %2304 = vmatprep.subr.mxu1 %v2819_v0  ;;  %2285 = vmatprep.subr.mxu0 %v2819_v0  ;;  %v90_v15 = vmul.f32 %v2935_v10, %v83_v12  ;;  %v2960_v16 = vld [vmem:[%s3568_s1] sm:$0x3]  ;;  %v3032_v28 = vld [vmem:[#allocation2 + $0x68] sm:$0xff]  ;;  %v3040_v30 = vld [vmem:[#allocation2 + $0x58] sm:$0xff] }
  0x15   :  { %2305 = vmatpush3.msra.mxu1 %v2912_v6  ;;  %2286 = vmatpush3.msra.mxu0 %v2917_v7  ;;  %vm180_vm1 = vcmp.eq.s32.totalorder %v2960_v16, 0  ;;  %v2988_v22 = vld [vmem:[#allocation2] sm:$0xff]  ;;  %v3044_v31 = vld [vmem:[#allocation2 + $0x50] sm:$0xff]  ;;  %v3048_v32 = vld [vmem:[#allocation2 + $0x48] sm:$0xff]  ;;  %vm411_vm3 = vcmp.eq.s32.totalorder %v2960_v16, 1  ;;  %vm642_vm4 = vcmp.eq.s32.totalorder %v2960_v16, 2 }
  0x16   :  { %2306 = vmatprep.subr.mxu1 %v2819_v0  ;;  %2287 = vmatprep.subr.mxu0 %v2819_v0  ;;  %v97_v19 = vadd.f32 %v2940_v11, %v90_v15  ;;  %v2993_v23 = vld [vmem:[%s3571_s4 + $0x40] sm:$0xff]  ;;  %v181_v24 = vsel %vm180_vm1, 1, %v2821_v1  ;;  %v412_v34 = vsel %vm411_vm3, 1, %v2821_v1  ;;  %v643_v47 = vsel %vm642_vm4, 1, %v2821_v1 }
  0x17   :  { %2307 = vmatpush3.msra.mxu1 %v2923_v8  ;;  %2288 = vmatpush3.msra.mxu0 %v2928_v9  ;;  %v3036_v29 = vld [vmem:[#allocation2 + $0x60] sm:$0xff]  ;;  %vm873_vm7 = vcmp.eq.s32.totalorder %v2960_v16, 3  ;;  %vm1104_vm9 = vcmp.eq.s32.totalorder %v2960_v16, 4  ;;  %vm1335_vm11 = vcmp.eq.s32.totalorder %v2960_v16, 5  ;;  %vm1566_vm13 = vcmp.eq.s32.totalorder %v2960_v16, 6 }
  0x18   :  { %2308 = vmatprep.subr.mxu1 %v2819_v0  ;;  %2289 = vmatprep.subr.mxu0 %v2819_v0  ;;  %2746 = vtanh.f32 %v97_v19  ;;  %v3054_v33 = vld [vmem:[#allocation2 + $0x40] sm:$0xff]  ;;  %v874_v19 = vsel %vm873_vm7, 1, %v2821_v1  ;;  %vm1994_vm3 = vcmask 58400   ;;  %vm1981_vm4 = vcmask 25600  }
  0x19   :  { %2309 = vmatpush3.msra.mxu1 %v2947_v13  ;;  %2290 = vmatpush3.msra.mxu0 %v2952_v14  ;;  %v2033_v35 = vld [vmem:[%s3567_s0 + $0x2] sm:$0x3]  ;;  %v3068_v38 = vld [vmem:[%s3573_s6 + $0x1] ss:$0 sm:$0xff]  ;;  %v2037_v54 = vld [vmem:[%s3567_s0 + $0x4] sm:$0x3] }
  0x1a   :  { %2310 = vmatprep.subr.mxu1 %v2819_v0  ;;  %2291 = vmatprep.subr.mxu0 %v2819_v0  ;;  %v189_v36 = vmul.f32 %v2033_v35, %v2935_v10  ;;  %v420_v56 = vmul.f32 %v2037_v54, %v2935_v10 }
  0x1b   :  { %2311 = vmatpush3.msra.mxu1 %v2964_v17  ;;  %2292 = vmatpush3.msra.mxu0 %v2969_v18 }
  0x1c   :  { %2312 = vmatprep.subr.mxu1 %v2819_v0  ;;  %2293 = vmatprep.subr.mxu0 %v2819_v0  ;;  %v190_v37 = vadd.f32 %v2940_v11, %v189_v36  ;;  %v421_v57 = vadd.f32 %v2940_v11, %v420_v56  ;;  %v2045_v56 = vld [vmem:[%s3567_s0 + $0x8] sm:$0x3] }
  0x1d   :  { %2313 = vmatpush3.msra.mxu1 %v2976_v20  ;;  %2294 = vmatpush3.msra.mxu0 %v2981_v21 }
  0x1e   :  { %2314 = vmatprep.subr.mxu1 %v2819_v0  ;;  %2295 = vmatprep.subr.mxu0 %v2819_v0 }
  0x1f   :  { %2315 = vmatpush3.msra.mxu1 %v2988_v22  ;;  %2296 = vmatpush3.msra.mxu0 %v2993_v23 }
  0x20   :  { %183 = vperm.xlu0 %2744, %v181_v24   ;;  %2319 = vmatprep.subr.mxu0 %v2819_v0 }
  0x21   :  { %2338 = vmatprep.subr.mxu1 %v2819_v0  ;;  %645 = vperm.xlu1 %2745, %v643_v47  }
  0x24   :  { %414 = vperm.xlu0 %2744, %v412_v34  }
  0x25   :  { %v2747_v25 = vpop.eup %2746  ;;  %876 = vperm.xlu1 %2745, %v874_v19   ;;  %v1336_v19 = vsel %vm1335_vm11, 1, %v2821_v1 }
  0x26   :  { %2317 = vmatmul.mubr.msk.f32.vlgmr.msra.gmra.mxu1 %vm105_vm2, %v2747_v25  ;;  %2298 = vmatmul.mubr.msk.f32.vlgmr.msra.gmra.mxu0 %vm105_vm2, %v2747_v25 }
  0x27   :  { %2320 = vmatpush3.msra.mxu0 %v2899_v3  ;;  %2335 = vmatprep.mubr.msk.f32.mxu0 %vm2820_vm0, %v2819_v0 }
  0x28   :  { %2321 = vmatprep.subr.mxu0 %v2819_v0  ;;  %2354 = vmatprep.mubr.msk.f32.mxu1 %vm2820_vm0, %v2819_v0 }
  0x29   :  { %2322 = vmatpush3.msra.mxu0 %v2908_v5  ;;  %2339 = vmatpush3.msra.mxu1 %v3026_v26 }
  0x2a   :  { %2323 = vmatprep.subr.mxu0 %v2819_v0  ;;  %2340 = vmatprep.subr.mxu1 %v2819_v0 }
  0x2b   :  { %2324 = vmatpush3.msra.mxu0 %v2917_v7  ;;  %2341 = vmatpush3.msra.mxu1 %v3029_v27 }
  0x2c   :  { %2325 = vmatprep.subr.mxu0 %v2819_v0  ;;  %2342 = vmatprep.subr.mxu1 %v2819_v0 }
  0x2d   :  { %2326 = vmatpush3.msra.mxu0 %v2928_v9  ;;  %2343 = vmatpush3.msra.mxu1 %v3032_v28 }
  0x2e   :  { %2327 = vmatprep.subr.mxu0 %v2819_v0  ;;  %2344 = vmatprep.subr.mxu1 %v2819_v0 }
  0x2f   :  { %2328 = vmatpush3.msra.mxu0 %v2952_v14  ;;  %2345 = vmatpush3.msra.mxu1 %v3036_v29 }
  0x30   :  { %2329 = vmatprep.subr.mxu0 %v2819_v0  ;;  %2346 = vmatprep.subr.mxu1 %v2819_v0 }
  0x31   :  { %2330 = vmatpush3.msra.mxu0 %v2969_v18  ;;  %2347 = vmatpush3.msra.mxu1 %v3040_v30 }
  0x32   :  { %2331 = vmatprep.subr.mxu0 %v2819_v0  ;;  %2348 = vmatprep.subr.mxu1 %v2819_v0 }
  0x33   :  { %2332 = vmatpush3.msra.mxu0 %v2981_v21  ;;  %2349 = vmatpush3.msra.mxu1 %v3044_v31 }
  0x34   :  { %2333 = vmatprep.subr.mxu0 %v2819_v0  ;;  %2350 = vmatprep.subr.mxu1 %v2819_v0 }
  0x35   :  { %2334 = vmatpush3.msra.mxu0 %v2993_v23  ;;  %2351 = vmatpush3.msra.mxu1 %v3048_v32 }
  0x36   :  { %2357 = vmatprep.subr.mxu0 %v2819_v0  ;;  %2352 = vmatprep.subr.mxu1 %v2819_v0 }
  0x37   :  { %2353 = vmatpush3.msra.mxu1 %v3054_v33  ;;  %1338 = vperm.xlu1 %2745, %v1336_v19   ;;  %v1806_v19 = vld [vmem:[%s3574_s7 + $0x10] sm:$0xff] }
  0x38   :  { %2376 = vmatprep.subr.mxu1 %v2819_v0 }
  0x9b   :  { %v184_v55 = vpop.permute.xlu0 %183 }
  0x9c   :  { %vm185_vm5 = vcmp.eq.s32.totalorder %v184_v55, 1 }
  0x9f   :  { %v415_v58 = vpop.permute.xlu0 %414 }
  0xa0   :  { %vm416_vm6 = vcmp.eq.s32.totalorder %v415_v58, 1 }
  0xe6   :  { %v257_v39 = vpop.f32.mrf.mxu1  ;;  %v175_v40 = vpop.f32.mrf.mxu0 }
  0xe7   :  { %v261_v41 = vadd.f32 %v257_v39, %v190_v37  ;;  %v176_v42 = vadd.f32 %v3068_v38, %v175_v40  ;;  %v2041_v39 = vld [vmem:[%s3567_s0 + $0x6] sm:$0x3] }
  0xe8   :  { %v2318_v43 = vpop.f32.mrf.mxu1  ;;  %v2299_v44 = vpop.f32.mrf.mxu0  ;;  %v651_v40 = vmul.f32 %v2041_v39, %v2935_v10  ;;  %v2049_v39 = vld [vmem:[%s3567_s0 + $0xa] sm:$0x3] }
  0xe9   :  { %2748 = vtanh.f32 %v261_v41 }
  0xea   :  { %2750 = vtanh.f32 %v176_v42  ;;  %v652_v41 = vadd.f32 %v2940_v11, %v651_v40  ;;  %v646_v42 = vpop.permute.xlu1 %645  ;;  %v1113_v40 = vmul.f32 %v2049_v39, %v2935_v10  ;;  %v1896_v39 = vld [vmem:[%s3576_s9 + $0x18] sm:$0xff] }
  0xeb   :  { %vm647_vm8 = vcmp.eq.s32.totalorder %v646_v42, 1 }
  0xf6   :  { %v2749_v45 = vpop.eup %2748 }
  0xf7   :  { %v3071_v46 = vpop.eup %2750  ;;  %2336 = vmatmul.mubr.msk.f32.vlgmr.msra.gmra.mxu0 %vm105_vm2, %v2749_v45 }
  0xf8   :  { %2358 = vmatpush3.msra.mxu0 %v2894_v2  ;;  %2355 = vmatmul.mubr.msk.f32.vlgmr.msra.gmra.mxu1 %vm105_vm2, %v3071_v46  ;;  %v186_v62 = vsel %vm185_vm5, %v3071_v46, 0.0  ;;  %vm2013_vm5 = vcmask 58368  }
  0xf9   :  { %2359 = vmatprep.subr.mxu0 %v2819_v0  ;;  %2373 = vmatprep.mubr.msk.f32.mxu0 %vm2820_vm0, %v2819_v0 }
  0xfa   :  { %2360 = vmatpush3.msra.mxu0 %v2901_v4  ;;  %2377 = vmatpush3.msra.mxu1 %v2899_v3 }
  0xfb   :  { %2361 = vmatprep.subr.mxu0 %v2819_v0  ;;  %2378 = vmatprep.subr.mxu1 %v2819_v0 }
  0xfc   :  { %2362 = vmatpush3.msra.mxu0 %v2912_v6  ;;  %2379 = vmatpush3.msra.mxu1 %v2908_v5 }
  0xfd   :  { %2363 = vmatprep.subr.mxu0 %v2819_v0  ;;  %2380 = vmatprep.subr.mxu1 %v2819_v0 }
  0xfe   :  { %2364 = vmatpush3.msra.mxu0 %v2923_v8  ;;  %2381 = vmatpush3.msra.mxu1 %v2917_v7 }
  0xff   :  { %2365 = vmatprep.subr.mxu0 %v2819_v0  ;;  %2382 = vmatprep.subr.mxu1 %v2819_v0 }
 0x100   :  { %2366 = vmatpush3.msra.mxu0 %v2947_v13  ;;  %2383 = vmatpush3.msra.mxu1 %v2928_v9 }
 0x101   :  { %2367 = vmatprep.subr.mxu0 %v2819_v0  ;;  %2384 = vmatprep.subr.mxu1 %v2819_v0 }
 0x102   :  { %2368 = vmatpush3.msra.mxu0 %v2964_v17  ;;  %2385 = vmatpush3.msra.mxu1 %v2952_v14 }
 0x103   :  { %2369 = vmatprep.subr.mxu0 %v2819_v0  ;;  %2386 = vmatprep.subr.mxu1 %v2819_v0 }
 0x104   :  { %2370 = vmatpush3.msra.mxu0 %v2976_v20  ;;  %2387 = vmatpush3.msra.mxu1 %v2969_v18 }
 0x105   :  { %2371 = vmatprep.subr.mxu0 %v2819_v0  ;;  %2388 = vmatprep.subr.mxu1 %v2819_v0 }
 0x106   :  { %2372 = vmatpush3.msra.mxu0 %v2988_v22  ;;  %2389 = vmatpush3.msra.mxu1 %v2981_v21 }
 0x107   :  { %2374 = vmatmul.mubr.msk.f32.vlgmr.msra.gmra.mxu0 %vm105_vm2, %v2749_v45  ;;  %2395 = vmatprep.subr.mxu0 %v2819_v0 }
 0x108   :  { %2396 = vmatpush3.msra.mxu0 %v3026_v26  ;;  %2411 = vmatprep.mubr.msk.f32.mxu0 %vm2820_vm0, %v2819_v0 }
 0x109   :  { %2397 = vmatprep.subr.mxu0 %v2819_v0  ;;  %2390 = vmatprep.subr.mxu1 %v2819_v0 }
 0x10a   :  { %2398 = vmatpush3.msra.mxu0 %v3029_v27  ;;  %2391 = vmatpush3.msra.mxu1 %v2993_v23 }
 0x10b   :  { %2399 = vmatprep.subr.mxu0 %v2819_v0  ;;  %2392 = vmatprep.mubr.msk.f32.mxu1 %vm2820_vm0, %v2819_v0 }
 0x10c   :  { %2400 = vmatpush3.msra.mxu0 %v3032_v28  ;;  %2414 = vmatprep.subr.mxu1 %v2819_v0 }
 0x10d   :  { %2401 = vmatprep.subr.mxu0 %v2819_v0 }
 0x10e   :  { %2402 = vmatpush3.msra.mxu0 %v3036_v29 }
 0x10f   :  { %2403 = vmatprep.subr.mxu0 %v2819_v0 }
 0x110   :  { %2404 = vmatpush3.msra.mxu0 %v3040_v30 }
 0x111   :  { %2405 = vmatprep.subr.mxu0 %v2819_v0 }
 0x112   :  { %2406 = vmatpush3.msra.mxu0 %v3044_v31 }
 0x113   :  { %2407 = vmatprep.subr.mxu0 %v2819_v0 }
 0x114   :  { %2408 = vmatpush3.msra.mxu0 %v3048_v32 }
 0x115   :  { %2409 = vmatprep.subr.mxu0 %v2819_v0 }
 0x116   :  { %2410 = vmatpush3.msra.mxu0 %v3054_v33 }
 0x117   :  { %2433 = vmatprep.subr.mxu0 %v2819_v0 }
 0x1b7   :  { %v332_v48 = vpop.f32.mrf.mxu0 }
 0x1b8   :  { %v333_v49 = vadd.f32 %v3068_v38, %v332_v48  ;;  %v405_v50 = vpop.f32.mrf.mxu1 }
 0x1b9   :  { %v2337_v51 = vpop.f32.mrf.mxu0 }
 0x1ba   :  { %v409_v52 = vadd.f32 %v405_v50, %v333_v49  ;;  %v2356_v53 = vpop.f32.mrf.mxu1  ;;  %v1105_v49 = vsel %vm1104_vm9, 1, %v2821_v1 }
 0x1bb   :  { %1107 = vperm.xlu0 %2744, %v1105_v49  }
 0x1bc   :  { %2752 = vtanh.f32 %v409_v52 }
 0x1c7   :  { %v488_v59 = vpop.f32.mrf.mxu0 }
 0x1c8   :  { %v492_v60 = vadd.f32 %v488_v59, %v421_v57  ;;  %v882_v57 = vmul.f32 %v2045_v56, %v2935_v10  ;;  %v877_v59 = vpop.permute.xlu1 %876 }
 0x1c9   :  { %v2753_v61 = vpop.eup %2752  ;;  %v2375_v63 = vpop.f32.mrf.mxu0  ;;  %vm878_vm10 = vcmp.eq.s32.totalorder %v877_v59, 1 }
 0x1ca   :  { %2754 = vtanh.f32 %v492_v60  ;;  %v3140_v12 = vsel %vm416_vm6, %v2753_v61, %v186_v62  ;;  %2412 = vmatmul.mubr.msk.f32.vlgmr.msra.gmra.mxu0 %vm105_vm2, %v2753_v61  ;;  %v883_v58 = vadd.f32 %v2940_v11, %v882_v57 }
 0x1cb   :  { %2434 = vmatpush3.msra.mxu0 %v2899_v3  ;;  %2449 = vmatprep.mubr.msk.f32.mxu0 %vm2820_vm0, %v2819_v0 }
 0x1cc   :  { %2435 = vmatprep.subr.mxu0 %v2819_v0  ;;  %v1339_v16 = vpop.permute.xlu1 %1338 }
 0x1cd   :  { %2436 = vmatpush3.msra.mxu0 %v2908_v5  ;;  %vm1340_vm14 = vcmp.eq.s32.totalorder %v1339_v16, 1 }
 0x1ce   :  { %2437 = vmatprep.subr.mxu0 %v2819_v0 }
 0x1cf   :  { %2438 = vmatpush3.msra.mxu0 %v2917_v7 }
 0x1d0   :  { %2439 = vmatprep.subr.mxu0 %v2819_v0 }
 0x1d1   :  { %2440 = vmatpush3.msra.mxu0 %v2928_v9 }
 0x1d2   :  { %2441 = vmatprep.subr.mxu0 %v2819_v0 }
 0x1d3   :  { %2442 = vmatpush3.msra.mxu0 %v2952_v14 }
 0x1d4   :  { %2443 = vmatprep.subr.mxu0 %v2819_v0 }
 0x1d5   :  { %2444 = vmatpush3.msra.mxu0 %v2969_v18 }
 0x1d6   :  { %2445 = vmatprep.subr.mxu0 %v2819_v0 }
 0x1d7   :  { %v2755_v15 = vpop.eup %2754  ;;  %2446 = vmatpush3.msra.mxu0 %v2981_v21 }
 0x1d8   :  { %2393 = vmatmul.mubr.msk.f32.vlgmr.msra.gmra.mxu1 %vm105_vm2, %v2755_v15  ;;  %2447 = vmatprep.subr.mxu0 %v2819_v0 }
 0x1d9   :  { %2415 = vmatpush3.msra.mxu1 %v2894_v2  ;;  %2430 = vmatprep.mubr.msk.f32.mxu1 %vm2820_vm0, %v2819_v0 }
 0x1da   :  { %2416 = vmatprep.subr.mxu1 %v2819_v0  ;;  %2448 = vmatpush3.msra.mxu0 %v2993_v23 }
 0x1db   :  { %2417 = vmatpush3.msra.mxu1 %v2901_v4  ;;  %2471 = vmatprep.subr.mxu0 %v2819_v0 }
 0x1dc   :  { %2418 = vmatprep.subr.mxu1 %v2819_v0 }
 0x1dd   :  { %2419 = vmatpush3.msra.mxu1 %v2912_v6 }
 0x1de   :  { %2420 = vmatprep.subr.mxu1 %v2819_v0 }
 0x1df   :  { %2421 = vmatpush3.msra.mxu1 %v2923_v8 }
 0x1e0   :  { %2422 = vmatprep.subr.mxu1 %v2819_v0 }
 0x1e1   :  { %2423 = vmatpush3.msra.mxu1 %v2947_v13 }
 0x1e2   :  { %2424 = vmatprep.subr.mxu1 %v2819_v0 }
 0x1e3   :  { %2425 = vmatpush3.msra.mxu1 %v2964_v17 }
 0x1e4   :  { %2426 = vmatprep.subr.mxu1 %v2819_v0 }
 0x1e5   :  { %2427 = vmatpush3.msra.mxu1 %v2976_v20 }
 0x1e6   :  { %2428 = vmatprep.subr.mxu1 %v2819_v0 }
 0x1e7   :  { %2429 = vmatpush3.msra.mxu1 %v2988_v22 }
 0x1e8   :  { %2431 = vmatmul.mubr.msk.f32.vlgmr.msra.gmra.mxu1 %vm105_vm2, %v2755_v15  ;;  %2452 = vmatprep.subr.mxu1 %v2819_v0 }
 0x1e9   :  { %2453 = vmatpush3.msra.mxu1 %v3026_v26  ;;  %2468 = vmatprep.mubr.msk.f32.mxu1 %vm2820_vm0, %v2819_v0 }
 0x1ea   :  { %2454 = vmatprep.subr.mxu1 %v2819_v0 }
 0x1eb   :  { %2455 = vmatpush3.msra.mxu1 %v3029_v27 }
 0x1ec   :  { %2456 = vmatprep.subr.mxu1 %v2819_v0 }
 0x1ed   :  { %2457 = vmatpush3.msra.mxu1 %v3032_v28 }
 0x1ee   :  { %2458 = vmatprep.subr.mxu1 %v2819_v0 }
 0x1ef   :  { %2459 = vmatpush3.msra.mxu1 %v3036_v29 }
 0x1f0   :  { %2460 = vmatprep.subr.mxu1 %v2819_v0 }
 0x1f1   :  { %2461 = vmatpush3.msra.mxu1 %v3040_v30 }
 0x1f2   :  { %2462 = vmatprep.subr.mxu1 %v2819_v0 }
 0x1f3   :  { %2463 = vmatpush3.msra.mxu1 %v3044_v31 }
 0x1f4   :  { %2464 = vmatprep.subr.mxu1 %v2819_v0 }
 0x1f5   :  { %2465 = vmatpush3.msra.mxu1 %v3048_v32 }
 0x1f6   :  { %2466 = vmatprep.subr.mxu1 %v2819_v0 }
 0x1f7   :  { %2467 = vmatpush3.msra.mxu1 %v3054_v33 }
 0x1f8   :  { %2490 = vmatprep.subr.mxu1 %v2819_v0 }
 0x236   :  { %v1108_v42 = vpop.permute.xlu0 %1107 }
 0x237   :  { %vm1109_vm12 = vcmp.eq.s32.totalorder %v1108_v42, 1 }
 0x28a   :  { %v636_v24 = vpop.f32.mrf.mxu0 }
 0x28c   :  { %v2413_v25 = vpop.f32.mrf.mxu0 }
 0x298   :  { %v563_v34 = vpop.f32.mrf.mxu1 }
 0x299   :  { %v564_v35 = vadd.f32 %v3068_v38, %v563_v34 }
 0x29a   :  { %v2394_v36 = vpop.f32.mrf.mxu1 }
 0x29b   :  { %v640_v37 = vadd.f32 %v636_v24, %v564_v35 }
 0x29d   :  { %2756 = vtanh.f32 %v640_v37 }
 0x2a8   :  { %v719_v43 = vpop.f32.mrf.mxu1 }
 0x2a9   :  { %v723_v44 = vadd.f32 %v719_v43, %v652_v41  ;;  %v1114_v41 = vadd.f32 %v2940_v11, %v1113_v40 }
 0x2aa   :  { %v2757_v45 = vpop.eup %2756  ;;  %v2432_v46 = vpop.f32.mrf.mxu1 }
 0x2ab   :  { %2758 = vtanh.f32 %v723_v44  ;;  %v3208_v47 = vsel %vm647_vm8, %v2757_v45, %v3140_v12  ;;  %2469 = vmatmul.mubr.msk.f32.vlgmr.msra.gmra.mxu1 %vm105_vm2, %v2757_v45 }
 0x2ac   :  { %2491 = vmatpush3.msra.mxu1 %v2899_v3  ;;  %2506 = vmatprep.mubr.msk.f32.mxu1 %vm2820_vm0, %v2819_v0 }
 0x2ad   :  { %2492 = vmatprep.subr.mxu1 %v2819_v0 }
 0x2ae   :  { %2493 = vmatpush3.msra.mxu1 %v2908_v5 }
 0x2af   :  { %2494 = vmatprep.subr.mxu1 %v2819_v0 }
 0x2b0   :  { %2495 = vmatpush3.msra.mxu1 %v2917_v7 }
 0x2b1   :  { %2496 = vmatprep.subr.mxu1 %v2819_v0 }
 0x2b2   :  { %2497 = vmatpush3.msra.mxu1 %v2928_v9 }
 0x2b3   :  { %2498 = vmatprep.subr.mxu1 %v2819_v0 }
 0x2b4   :  { %2499 = vmatpush3.msra.mxu1 %v2952_v14 }
 0x2b5   :  { %2500 = vmatprep.subr.mxu1 %v2819_v0 }
 0x2b6   :  { %2501 = vmatpush3.msra.mxu1 %v2969_v18 }
 0x2b7   :  { %2502 = vmatprep.subr.mxu1 %v2819_v0 }
 0x2b8   :  { %v2759_v48 = vpop.eup %2758  ;;  %2503 = vmatpush3.msra.mxu1 %v2981_v21 }
 0x2b9   :  { %2450 = vmatmul.mubr.msk.f32.vlgmr.msra.gmra.mxu0 %vm105_vm2, %v2759_v48  ;;  %2504 = vmatprep.subr.mxu1 %v2819_v0 }
 0x2ba   :  { %2472 = vmatpush3.msra.mxu0 %v2894_v2  ;;  %2487 = vmatprep.mubr.msk.f32.mxu0 %vm2820_vm0, %v2819_v0 }
 0x2bb   :  { %2473 = vmatprep.subr.mxu0 %v2819_v0  ;;  %2505 = vmatpush3.msra.mxu1 %v2993_v23 }
 0x2bc   :  { %2474 = vmatpush3.msra.mxu0 %v2901_v4  ;;  %2528 = vmatprep.subr.mxu1 %v2819_v0 }
 0x2bd   :  { %2475 = vmatprep.subr.mxu0 %v2819_v0 }
 0x2be   :  { %2476 = vmatpush3.msra.mxu0 %v2912_v6 }
 0x2bf   :  { %2477 = vmatprep.subr.mxu0 %v2819_v0 }
 0x2c0   :  { %2478 = vmatpush3.msra.mxu0 %v2923_v8 }
 0x2c1   :  { %2479 = vmatprep.subr.mxu0 %v2819_v0 }
 0x2c2   :  { %2480 = vmatpush3.msra.mxu0 %v2947_v13 }
 0x2c3   :  { %2481 = vmatprep.subr.mxu0 %v2819_v0 }
 0x2c4   :  { %2482 = vmatpush3.msra.mxu0 %v2964_v17 }
 0x2c5   :  { %2483 = vmatprep.subr.mxu0 %v2819_v0 }
 0x2c6   :  { %2484 = vmatpush3.msra.mxu0 %v2976_v20 }
 0x2c7   :  { %2485 = vmatprep.subr.mxu0 %v2819_v0 }
 0x2c8   :  { %2486 = vmatpush3.msra.mxu0 %v2988_v22 }
 0x2c9   :  { %2488 = vmatmul.mubr.msk.f32.vlgmr.msra.gmra.mxu0 %vm105_vm2, %v2759_v48  ;;  %2509 = vmatprep.subr.mxu0 %v2819_v0 }
 0x2ca   :  { %2510 = vmatpush3.msra.mxu0 %v3026_v26  ;;  %2525 = vmatprep.mubr.msk.f32.mxu0 %vm2820_vm0, %v2819_v0 }
 0x2cb   :  { %2511 = vmatprep.subr.mxu0 %v2819_v0 }
 0x2cc   :  { %2512 = vmatpush3.msra.mxu0 %v3029_v27 }
 0x2cd   :  { %2513 = vmatprep.subr.mxu0 %v2819_v0 }
 0x2ce   :  { %2514 = vmatpush3.msra.mxu0 %v3032_v28 }
 0x2cf   :  { %2515 = vmatprep.subr.mxu0 %v2819_v0 }
 0x2d0   :  { %2516 = vmatpush3.msra.mxu0 %v3036_v29 }
 0x2d1   :  { %2517 = vmatprep.subr.mxu0 %v2819_v0 }
 0x2d2   :  { %2518 = vmatpush3.msra.mxu0 %v3040_v30 }
 0x2d3   :  { %2519 = vmatprep.subr.mxu0 %v2819_v0 }
 0x2d4   :  { %2520 = vmatpush3.msra.mxu0 %v3044_v31 }
 0x2d5   :  { %2521 = vmatprep.subr.mxu0 %v2819_v0 }
 0x2d6   :  { %2522 = vmatpush3.msra.mxu0 %v3048_v32 }
 0x2d7   :  { %2523 = vmatprep.subr.mxu0 %v2819_v0 }
 0x2d8   :  { %2524 = vmatpush3.msra.mxu0 %v3054_v33 }
 0x2d9   :  { %2547 = vmatprep.subr.mxu0 %v2819_v0 }
 0x36b   :  { %v867_v50 = vpop.f32.mrf.mxu1 }
 0x36d   :  { %v2470_v51 = vpop.f32.mrf.mxu1 }
 0x379   :  { %v794_v52 = vpop.f32.mrf.mxu0 }
 0x37a   :  { %v795_v53 = vadd.f32 %v3068_v38, %v794_v52  ;;  %v2053_v52 = vld [vmem:[%s3567_s0 + $0xc] sm:$0x3] }
 0x37b   :  { %v2451_v54 = vpop.f32.mrf.mxu0 }
 0x37c   :  { %v871_v55 = vadd.f32 %v867_v50, %v795_v53  ;;  %v1344_v53 = vmul.f32 %v2053_v52, %v2935_v10  ;;  %v2789_v10 = vld [vmem:[#allocation2 + $0x20] sm:$0xff] }
 0x37e   :  { %2760 = vtanh.f32 %v871_v55  ;;  %v1345_v54 = vadd.f32 %v2940_v11, %v1344_v53  ;;  %v2790_v11 = vld [vmem:[%s3568_s1] sm:$0x3] }
 0x37f   :  { %vm1797_vm15 = vcmp.eq.s32.totalorder %v2790_v11, 7 }
 0x389   :  { %v950_v60 = vpop.f32.mrf.mxu0 }
 0x38a   :  { %v954_v61 = vadd.f32 %v950_v60, %v883_v58 }
 0x38b   :  { %v2761_v62 = vpop.eup %2760  ;;  %v2489_v63 = vpop.f32.mrf.mxu0 }
 0x38c   :  { %2762 = vtanh.f32 %v954_v61  ;;  %v3276_v12 = vsel %vm878_vm10, %v2761_v62, %v3208_v47  ;;  %2526 = vmatmul.mubr.msk.f32.vlgmr.msra.gmra.mxu0 %vm105_vm2, %v2761_v62  ;;  %v1811_v61 = vld [vmem:[%s3574_s7 + $0x38] sm:$0xff]  ;;  %v1810_v62 = vld [vmem:[%s3574_s7 + $0x30] sm:$0xff]  ;;  %v1809_v63 = vld [vmem:[%s3574_s7 + $0x28] sm:$0xff] }
 0x38d   :  { %2548 = vmatpush3.msra.mxu0 %v2899_v3  ;;  %2563 = vmatprep.mubr.msk.f32.mxu0 %vm2820_vm0, %v2819_v0 }
 0x38e   :  { %2549 = vmatprep.subr.mxu0 %v2819_v0 }
 0x38f   :  { %2550 = vmatpush3.msra.mxu0 %v2908_v5 }
 0x390   :  { %2551 = vmatprep.subr.mxu0 %v2819_v0 }
 0x391   :  { %2552 = vmatpush3.msra.mxu0 %v2917_v7 }
 0x392   :  { %2553 = vmatprep.subr.mxu0 %v2819_v0 }
 0x393   :  { %2554 = vmatpush3.msra.mxu0 %v2928_v9 }
 0x394   :  { %2555 = vmatprep.subr.mxu0 %v2819_v0 }
 0x395   :  { %2556 = vmatpush3.msra.mxu0 %v2952_v14 }
 0x396   :  { %2557 = vmatprep.subr.mxu0 %v2819_v0 }
 0x397   :  { %2558 = vmatpush3.msra.mxu0 %v2969_v18 }
 0x398   :  { %2559 = vmatprep.subr.mxu0 %v2819_v0 }
 0x399   :  { %v2763_v15 = vpop.eup %2762  ;;  %2560 = vmatpush3.msra.mxu0 %v2981_v21 }
 0x39a   :  { %2507 = vmatmul.mubr.msk.f32.vlgmr.msra.gmra.mxu1 %vm105_vm2, %v2763_v15  ;;  %2561 = vmatprep.subr.mxu0 %v2819_v0 }
 0x39b   :  { %2529 = vmatpush3.msra.mxu1 %v2894_v2  ;;  %2544 = vmatprep.mubr.msk.f32.mxu1 %vm2820_vm0, %v2819_v0 }
 0x39c   :  { %2530 = vmatprep.subr.mxu1 %v2819_v0  ;;  %2562 = vmatpush3.msra.mxu0 %v2993_v23 }
 0x39d   :  { %2531 = vmatpush3.msra.mxu1 %v2901_v4  ;;  %2585 = vmatprep.subr.mxu0 %v2819_v0 }
 0x39e   :  { %2532 = vmatprep.subr.mxu1 %v2819_v0 }
 0x39f   :  { %2533 = vmatpush3.msra.mxu1 %v2912_v6 }
 0x3a0   :  { %2534 = vmatprep.subr.mxu1 %v2819_v0 }
 0x3a1   :  { %2535 = vmatpush3.msra.mxu1 %v2923_v8 }
 0x3a2   :  { %2536 = vmatprep.subr.mxu1 %v2819_v0 }
 0x3a3   :  { %2537 = vmatpush3.msra.mxu1 %v2947_v13 }
 0x3a4   :  { %2538 = vmatprep.subr.mxu1 %v2819_v0 }
 0x3a5   :  { %2539 = vmatpush3.msra.mxu1 %v2964_v17 }
 0x3a6   :  { %2540 = vmatprep.subr.mxu1 %v2819_v0 }
 0x3a7   :  { %2541 = vmatpush3.msra.mxu1 %v2976_v20 }
 0x3a8   :  { %2542 = vmatprep.subr.mxu1 %v2819_v0 }
 0x3a9   :  { %2543 = vmatpush3.msra.mxu1 %v2988_v22 }
 0x3aa   :  { %2545 = vmatmul.mubr.msk.f32.vlgmr.msra.gmra.mxu1 %vm105_vm2, %v2763_v15  ;;  %2566 = vmatprep.subr.mxu1 %v2819_v0  ;;  %v1807_v15 = vld [vmem:[%s3574_s7 + $0x18] sm:$0xff] }
 0x3ab   :  { %2567 = vmatpush3.msra.mxu1 %v3026_v26  ;;  %2582 = vmatprep.mubr.msk.f32.mxu1 %vm2820_vm0, %v2819_v0 }
 0x3ac   :  { %2568 = vmatprep.subr.mxu1 %v2819_v0 }
 0x3ad   :  { %2569 = vmatpush3.msra.mxu1 %v3029_v27 }
 0x3ae   :  { %2570 = vmatprep.subr.mxu1 %v2819_v0 }
 0x3af   :  { %2571 = vmatpush3.msra.mxu1 %v3032_v28 }
 0x3b0   :  { %2572 = vmatprep.subr.mxu1 %v2819_v0 }
 0x3b1   :  { %2573 = vmatpush3.msra.mxu1 %v3036_v29 }
 0x3b2   :  { %2574 = vmatprep.subr.mxu1 %v2819_v0 }
 0x3b3   :  { %2575 = vmatpush3.msra.mxu1 %v3040_v30 }
 0x3b4   :  { %2576 = vmatprep.subr.mxu1 %v2819_v0 }
 0x3b5   :  { %2577 = vmatpush3.msra.mxu1 %v3044_v31 }
 0x3b6   :  { %2578 = vmatprep.subr.mxu1 %v2819_v0 }
 0x3b7   :  { %2579 = vmatpush3.msra.mxu1 %v3048_v32 }
 0x3b8   :  { %2580 = vmatprep.subr.mxu1 %v2819_v0 }
 0x3b9   :  { %2581 = vmatpush3.msra.mxu1 %v3054_v33 }
 0x3ba   :  { %2604 = vmatprep.subr.mxu1 %v2819_v0 }
 0x44c   :  { %v1098_v24 = vpop.f32.mrf.mxu0 }
 0x44e   :  { %v2527_v25 = vpop.f32.mrf.mxu0 }
 0x44f   :  { %v1804_v25 = vld [vmem:[%s3574_s7] sm:$0xff] }
 0x45a   :  { %v1025_v34 = vpop.f32.mrf.mxu1 }
 0x45b   :  { %v1026_v35 = vadd.f32 %v3068_v38, %v1025_v34  ;;  %v1900_v34 = vld [vmem:[%s3576_s9 + $0x38] sm:$0xff] }
 0x45c   :  { %v2508_v36 = vpop.f32.mrf.mxu1 }
 0x45d   :  { %v1102_v37 = vadd.f32 %v1098_v24, %v1026_v35  ;;  %v1805_v24 = vld [vmem:[%s3574_s7 + $0x8] sm:$0xff]  ;;  %v1899_v35 = vld [vmem:[%s3576_s9 + $0x30] sm:$0xff] }
 0x45e   :  { %v1898_v36 = vld [vmem:[%s3576_s9 + $0x28] sm:$0xff] }
 0x45f   :  { %2764 = vtanh.f32 %v1102_v37  ;;  %v1897_v37 = vld [vmem:[%s3576_s9 + $0x20] sm:$0xff] }
 0x46a   :  { %v1181_v43 = vpop.f32.mrf.mxu1 }
 0x46b   :  { %v1185_v44 = vadd.f32 %v1181_v43, %v1114_v41  ;;  %v2793_v43 = vld [vmem:[%s3573_s6 + $0x1] ss:$0 sm:$0xff] }
 0x46c   :  { %v2765_v45 = vpop.eup %2764  ;;  %v2546_v46 = vpop.f32.mrf.mxu1 }
 0x46d   :  { %2766 = vtanh.f32 %v1185_v44  ;;  %v3344_v47 = vsel %vm1109_vm12, %v2765_v45, %v3276_v12  ;;  %2583 = vmatmul.mubr.msk.f32.vlgmr.msra.gmra.mxu1 %vm105_vm2, %v2765_v45  ;;  %v1808_v12 = vld [vmem:[%s3574_s7 + $0x20] sm:$0xff] }
 0x46e   :  { %2605 = vmatpush3.msra.mxu1 %v2899_v3  ;;  %2620 = vmatprep.mubr.msk.f32.mxu1 %vm2820_vm0, %v2819_v0 }
 0x46f   :  { %2606 = vmatprep.subr.mxu1 %v2819_v0 }
 0x470   :  { %2607 = vmatpush3.msra.mxu1 %v2908_v5 }
 0x471   :  { %2608 = vmatprep.subr.mxu1 %v2819_v0 }
 0x472   :  { %2609 = vmatpush3.msra.mxu1 %v2917_v7 }
 0x473   :  { %2610 = vmatprep.subr.mxu1 %v2819_v0 }
 0x474   :  { %2611 = vmatpush3.msra.mxu1 %v2928_v9 }
 0x475   :  { %2612 = vmatprep.subr.mxu1 %v2819_v0 }
 0x476   :  { %2613 = vmatpush3.msra.mxu1 %v2952_v14 }
 0x477   :  { %2614 = vmatprep.subr.mxu1 %v2819_v0 }
 0x478   :  { %2615 = vmatpush3.msra.mxu1 %v2969_v18 }
 0x479   :  { %2616 = vmatprep.subr.mxu1 %v2819_v0 }
 0x47a   :  { %v2767_v48 = vpop.eup %2766  ;;  %2617 = vmatpush3.msra.mxu1 %v2981_v21 }
 0x47b   :  { %2564 = vmatmul.mubr.msk.f32.vlgmr.msra.gmra.mxu0 %vm105_vm2, %v2767_v48  ;;  %2618 = vmatprep.subr.mxu1 %v2819_v0 }
 0x47c   :  { %2586 = vmatpush3.msra.mxu0 %v2894_v2  ;;  %2601 = vmatprep.mubr.msk.f32.mxu0 %vm2820_vm0, %v2819_v0  ;;  %v1567_v2 = vsel %vm1566_vm13, 1, %v2821_v1 }
 0x47d   :  { %2587 = vmatprep.subr.mxu0 %v2819_v0  ;;  %2619 = vmatpush3.msra.mxu1 %v2993_v23 }
 0x47e   :  { %2588 = vmatpush3.msra.mxu0 %v2901_v4  ;;  %2642 = vmatprep.subr.mxu1 %v2819_v0 }
 0x47f   :  { %2589 = vmatprep.subr.mxu0 %v2819_v0  ;;  %1569 = vperm.xlu0 %2744, %v1567_v2  }
 0x480   :  { %2590 = vmatpush3.msra.mxu0 %v2912_v6 }
 0x481   :  { %2591 = vmatprep.subr.mxu0 %v2819_v0 }
 0x482   :  { %2592 = vmatpush3.msra.mxu0 %v2923_v8 }
 0x483   :  { %2593 = vmatprep.subr.mxu0 %v2819_v0 }
 0x484   :  { %2594 = vmatpush3.msra.mxu0 %v2947_v13 }
 0x485   :  { %2595 = vmatprep.subr.mxu0 %v2819_v0 }
 0x486   :  { %2596 = vmatpush3.msra.mxu0 %v2964_v17 }
 0x487   :  { %2597 = vmatprep.subr.mxu0 %v2819_v0 }
 0x488   :  { %2598 = vmatpush3.msra.mxu0 %v2976_v20 }
 0x489   :  { %2599 = vmatprep.subr.mxu0 %v2819_v0 }
 0x48a   :  { %2600 = vmatpush3.msra.mxu0 %v2988_v22 }
 0x48b   :  { %2602 = vmatmul.mubr.msk.f32.vlgmr.msra.gmra.mxu0 %vm105_vm2, %v2767_v48  ;;  %2623 = vmatprep.subr.mxu0 %v2819_v0 }
 0x48c   :  { %2624 = vmatpush3.msra.mxu0 %v3026_v26  ;;  %2639 = vmatprep.mubr.msk.f32.mxu0 %vm2820_vm0, %v2819_v0 }
 0x48d   :  { %2625 = vmatprep.subr.mxu0 %v2819_v0 }
 0x48e   :  { %2626 = vmatpush3.msra.mxu0 %v3029_v27 }
 0x48f   :  { %2627 = vmatprep.subr.mxu0 %v2819_v0 }
 0x490   :  { %2628 = vmatpush3.msra.mxu0 %v3032_v28 }
 0x491   :  { %2629 = vmatprep.subr.mxu0 %v2819_v0 }
 0x492   :  { %2630 = vmatpush3.msra.mxu0 %v3036_v29 }
 0x493   :  { %2631 = vmatprep.subr.mxu0 %v2819_v0 }
 0x494   :  { %2632 = vmatpush3.msra.mxu0 %v3040_v30 }
 0x495   :  { %2633 = vmatprep.subr.mxu0 %v2819_v0 }
 0x496   :  { %2634 = vmatpush3.msra.mxu0 %v3044_v31 }
 0x497   :  { %2635 = vmatprep.subr.mxu0 %v2819_v0 }
 0x498   :  { %2636 = vmatpush3.msra.mxu0 %v3048_v32 }
 0x499   :  { %2637 = vmatprep.subr.mxu0 %v2819_v0 }
 0x49a   :  { %2638 = vmatpush3.msra.mxu0 %v3054_v33 }
 0x49b   :  { %2661 = vmatprep.subr.mxu0 %v2819_v0 }
 0x52d   :  { %v1329_v4 = vpop.f32.mrf.mxu1 }
 0x52f   :  { %v2584_v6 = vpop.f32.mrf.mxu1 }
 0x530   :  { %v1894_v6 = vld [vmem:[%s3576_s9 + $0x8] sm:$0xff] }
 0x53b   :  { %v1256_v8 = vpop.f32.mrf.mxu0 }
 0x53c   :  { %v1257_v49 = vadd.f32 %v3068_v38, %v1256_v8  ;;  %v1893_v8 = vld [vmem:[%s3576_s9] sm:$0xff] }
 0x53d   :  { %v2565_v50 = vpop.f32.mrf.mxu0 }
 0x53e   :  { %v1333_v51 = vadd.f32 %v1329_v4, %v1257_v49  ;;  %v1895_v4 = vld [vmem:[%s3576_s9 + $0x10] sm:$0xff]  ;;  %v2061_v49 = vld [vmem:[%s3575_s8] ss:$0 sm:$0xff]  ;;  %s2822_s8 = smov 124  }
 0x540   :  { %2768 = vtanh.f32 %v1333_v51 }
 0x54b   :  { %v1412_v55 = vpop.f32.mrf.mxu0 }
 0x54c   :  { %v1416_v56 = vadd.f32 %v1412_v55, %v1345_v54  ;;  %v2063_v54 = vld [vmem:[%s3577_s10] ss:$0 sm:$0xff] }
 0x54d   :  { %v2769_v57 = vpop.eup %2768  ;;  %v2603_v58 = vpop.f32.mrf.mxu0 }
 0x54e   :  { %2770 = vtanh.f32 %v1416_v56  ;;  %v3412_v59 = vsel %vm1340_vm14, %v2769_v57, %v3344_v47  ;;  %2640 = vmatmul.mubr.msk.f32.vlgmr.msra.gmra.mxu0 %vm105_vm2, %v2769_v57 }
 0x54f   :  { %2662 = vmatpush3.msra.mxu0 %v2899_v3  ;;  %2677 = vmatprep.mubr.msk.f32.mxu0 %vm2820_vm0, %v2819_v0 }
 0x550   :  { %2663 = vmatprep.subr.mxu0 %v2819_v0 }
 0x551   :  { %2664 = vmatpush3.msra.mxu0 %v2908_v5  ;;  %v2786_v5 = vld [vmem:[#allocation2 + $0x38] sm:$0xff] }
 0x552   :  { %2665 = vmatprep.subr.mxu0 %v2819_v0 }
 0x553   :  { %2666 = vmatpush3.msra.mxu0 %v2917_v7  ;;  %v2787_v7 = vld [vmem:[#allocation2 + $0x30] sm:$0xff] }
 0x554   :  { %2667 = vmatprep.subr.mxu0 %v2819_v0 }
 0x555   :  { %2668 = vmatpush3.msra.mxu0 %v2928_v9  ;;  %v2788_v9 = vld [vmem:[#allocation2 + $0x28] sm:$0xff] }
 0x556   :  { %2669 = vmatprep.subr.mxu0 %v2819_v0 }
 0x557   :  { %2670 = vmatpush3.msra.mxu0 %v2952_v14 }
 0x558   :  { %2671 = vmatprep.subr.mxu0 %v2819_v0 }
 0x559   :  { %2672 = vmatpush3.msra.mxu0 %v2969_v18 }
 0x55a   :  { %2673 = vmatprep.subr.mxu0 %v2819_v0 }
 0x55b   :  { %v2771_v3 = vpop.eup %2770  ;;  %2674 = vmatpush3.msra.mxu0 %v2981_v21 }
 0x55c   :  { %2621 = vmatmul.mubr.msk.f32.vlgmr.msra.gmra.mxu1 %vm105_vm2, %v2771_v3  ;;  %2675 = vmatprep.subr.mxu0 %v2819_v0 }
 0x55d   :  { %2643 = vmatpush3.msra.mxu1 %v2786_v5  ;;  %2658 = vmatprep.mubr.msk.f32.mxu1 %vm2820_vm0, %v2819_v0 }
 0x55e   :  { %2644 = vmatprep.subr.mxu1 %v2819_v0  ;;  %2676 = vmatpush3.msra.mxu0 %v2993_v23  ;;  %v2057_v23 = vld [vmem:[%s3567_s0 + $0xe] sm:$0x3] }
 0x55f   :  { %2645 = vmatpush3.msra.mxu1 %v2787_v7  ;;  %2699 = vmatprep.subr.mxu0 %v2819_v0 }
 0x560   :  { %2646 = vmatprep.subr.mxu1 %v2819_v0 }
 0x561   :  { %2647 = vmatpush3.msra.mxu1 %v2788_v9 }
 0x562   :  { %2648 = vmatprep.subr.mxu1 %v2819_v0 }
 0x563   :  { %2649 = vmatpush3.msra.mxu1 %v2789_v10 }
 0x564   :  { %2650 = vmatprep.subr.mxu1 %v2819_v0 }
 0x565   :  { %2651 = vmatpush3.msra.mxu1 %v2947_v13  ;;  %v1798_v13 = vsel %vm1797_vm15, 1, %v2821_v1  ;;  %v2792_v1 = vld [vmem:[%s3570_s3] ss:$0 sm:$0xff] }
 0x566   :  { %2652 = vmatprep.subr.mxu1 %v2819_v0  ;;  %1800 = vperm.xlu1 %2745, %v1798_v13  }
 0x567   :  { %2653 = vmatpush3.msra.mxu1 %v2964_v17 }
 0x568   :  { %2654 = vmatprep.subr.mxu1 %v2819_v0 }
 0x569   :  { %2655 = vmatpush3.msra.mxu1 %v2976_v20 }
 0x56a   :  { %2656 = vmatprep.subr.mxu1 %v2819_v0 }
 0x56b   :  { %2657 = vmatpush3.msra.mxu1 %v2988_v22 }
 0x56c   :  { %2659 = vmatmul.mubr.msk.f32.vlgmr.msra.gmra.mxu1 %vm105_vm2, %v2771_v3  ;;  %2680 = vmatprep.subr.mxu1 %v2819_v0 }
 0x56d   :  { %2681 = vmatpush3.msra.mxu1 %v3026_v26  ;;  %2696 = vmatprep.mubr.msk.f32.mxu1 %vm2820_vm0, %v2819_v0  ;;  %v2791_v26 = vld [vmem:[%s3569_s2] ss:$0 sm:$0xff] }
 0x56e   :  { %2682 = vmatprep.subr.mxu1 %v2819_v0 }
 0x56f   :  { %2683 = vmatpush3.msra.mxu1 %v3029_v27  ;;  %v1575_v27 = vmul.f32 %v2791_v26, %v2057_v23 }
 0x570   :  { %2684 = vmatprep.subr.mxu1 %v2819_v0 }
 0x571   :  { %2685 = vmatpush3.msra.mxu1 %v3032_v28  ;;  %v1576_v28 = vadd.f32 %v2792_v1, %v1575_v27 }
 0x572   :  { %2686 = vmatprep.subr.mxu1 %v2819_v0 }
 0x573   :  { %2687 = vmatpush3.msra.mxu1 %v3036_v29  ;;  %v1570_v29 = vpop.permute.xlu0 %1569 }
 0x574   :  { %2688 = vmatprep.subr.mxu1 %v2819_v0  ;;  %vm1571_vm1 = vcmp.eq.s32.totalorder %v1570_v29, 1 }
 0x575   :  { %2689 = vmatpush3.msra.mxu1 %v3040_v30 }
 0x576   :  { %2690 = vmatprep.subr.mxu1 %v2819_v0 }
 0x577   :  { %2691 = vmatpush3.msra.mxu1 %v3044_v31 }
 0x578   :  { %2692 = vmatprep.subr.mxu1 %v2819_v0 }
 0x579   :  { %2693 = vmatpush3.msra.mxu1 %v3048_v32 }
 0x57a   :  { %2694 = vmatprep.subr.mxu1 %v2819_v0 }
 0x57b   :  { %2695 = vmatpush3.msra.mxu1 %v3054_v33 }
 0x57c   :  { %2718 = vmatprep.subr.mxu1 %v2819_v0 }
 0x5e1   :  { %v1801_v47 = vpop.permute.xlu1 %1800 }
 0x60e   :  { %v1560_v14 = vpop.f32.mrf.mxu0 }
 0x610   :  { %v2641_v17 = vpop.f32.mrf.mxu0 }
 0x61c   :  { %v1487_v18 = vpop.f32.mrf.mxu1 }
 0x61d   :  { %v1488_v20 = vadd.f32 %v3068_v38, %v1487_v18 }
 0x61e   :  { %v2622_v21 = vpop.f32.mrf.mxu1 }
 0x61f   :  { %v1564_v22 = vadd.f32 %v1560_v14, %v1488_v20 }
 0x621   :  { %2772 = vtanh.f32 %v1564_v22 }
 0x62c   :  { %v1643_v30 = vpop.f32.mrf.mxu1 }
 0x62d   :  { %v1647_v31 = vadd.f32 %v1643_v30, %v1576_v28 }
 0x62e   :  { %v2773_v32 = vpop.eup %2772  ;;  %v2660_v33 = vpop.f32.mrf.mxu1 }
 0x62f   :  { %2774 = vtanh.f32 %v1647_v31  ;;  %v1572_v38 = vsel %vm1571_vm1, %v2773_v32, %v3412_v59  ;;  %2697 = vmatmul.mubr.msk.f32.vlgmr.msra.gmra.mxu1 %vm105_vm2, %v2773_v32 }
 0x630   :  { %2734 = vmatprep.mubr.msk.f32.mxu1 %vm2820_vm0, %v2819_v0  ;;  %2719 = vmatpush3.msra.mxu1 %v1900_v34 }
 0x631   :  { %2720 = vmatprep.subr.mxu1 %v2819_v0 }
 0x632   :  { %2721 = vmatpush3.msra.mxu1 %v1899_v35 }
 0x633   :  { %2722 = vmatprep.subr.mxu1 %v2819_v0 }
 0x634   :  { %2723 = vmatpush3.msra.mxu1 %v1898_v36 }
 0x635   :  { %2724 = vmatprep.subr.mxu1 %v2819_v0 }
 0x636   :  { %2725 = vmatpush3.msra.mxu1 %v1897_v37 }
 0x637   :  { %2726 = vmatprep.subr.mxu1 %v2819_v0 }
 0x638   :  { %2727 = vmatpush3.msra.mxu1 %v1896_v39 }
 0x639   :  { %2728 = vmatprep.subr.mxu1 %v2819_v0 }
 0x63a   :  { %2729 = vmatpush3.msra.mxu1 %v1895_v4 }
 0x63b   :  { %2730 = vmatprep.subr.mxu1 %v2819_v0 }
 0x63c   :  { %v2775_v60 = vpop.eup %2774  ;;  %2731 = vmatpush3.msra.mxu1 %v1894_v6 }
 0x63d   :  { %2678 = vmatmul.mubr.msk.f32.vlgmr.msra.gmra.mxu0 %vm105_vm2, %v2775_v60  ;;  %2732 = vmatprep.subr.mxu1 %v2819_v0 }
 0x63e   :  { %2715 = vmatprep.mubr.msk.f32.mxu0 %vm2820_vm0, %v2819_v0  ;;  %2700 = vmatpush3.msra.mxu0 %v1811_v61  ;;  %vm1802_vm0 = vcmp.eq.s32.totalorder %v1801_v47, 1 }
 0x63f   :  { %2701 = vmatprep.subr.mxu0 %v2819_v0  ;;  %2733 = vmatpush3.msra.mxu1 %v1893_v8 }
 0x640   :  { %2702 = vmatpush3.msra.mxu0 %v1810_v62 }
 0x641   :  { %2703 = vmatprep.subr.mxu0 %v2819_v0 }
 0x642   :  { %2704 = vmatpush3.msra.mxu0 %v1809_v63 }
 0x643   :  { %2705 = vmatprep.subr.mxu0 %v2819_v0 }
 0x644   :  { %2706 = vmatpush3.msra.mxu0 %v1808_v12 }
 0x645   :  { %2707 = vmatprep.subr.mxu0 %v2819_v0 }
 0x646   :  { %2708 = vmatpush3.msra.mxu0 %v1807_v15 }
 0x647   :  { %2709 = vmatprep.subr.mxu0 %v2819_v0 }
 0x648   :  { %2710 = vmatpush3.msra.mxu0 %v1806_v19 }
 0x649   :  { %2711 = vmatprep.subr.mxu0 %v2819_v0 }
 0x64a   :  { %2712 = vmatpush3.msra.mxu0 %v1805_v24 }
 0x64b   :  { %2713 = vmatprep.subr.mxu0 %v2819_v0 }
 0x64c   :  { %2714 = vmatpush3.msra.mxu0 %v1804_v25 }
 0x6ef   :  { %v1791_v40 = vpop.f32.mrf.mxu1 }
 0x6f1   :  { %v2698_v41 = vpop.f32.mrf.mxu1 }
 0x6fd   :  { %v1718_v42 = vpop.f32.mrf.mxu0 }
 0x6fe   :  { %v1719_v44 = vadd.f32 %v2793_v43, %v1718_v42 }
 0x6ff   :  { %v2679_v45 = vpop.f32.mrf.mxu0 }
 0x700   :  { %v1795_v46 = vadd.f32 %v1791_v40, %v1719_v44 }
 0x702   :  { %2776 = vtanh.f32 %v1795_v46 }
 0x70f   :  { %v2777_v48 = vpop.eup %2776 }
 0x710   :  { %v1803_v2 = vsel %vm1802_vm0, %v2777_v48, %v1572_v38 }
 0x711   :  { %2716 = vmatmul.mubr.msk.f32.vlgmr.msra.gmra.mxu0 %vm105_vm2, %v1803_v2 }
 0x7d1   :  { %v1888_v50 = vpop.f32.mrf.mxu0 }
 0x7d2   :  { %v1889_v51 = vadd.f32 %v2061_v49, %v1888_v50 }
 0x7d3   :  { %v2717_v52 = vpop.f32.mrf.mxu0 }
 0x7d4   :  { %v1892_v53 = vmax.f32 %v1889_v51, 0.0 }
 0x7d6   :  { %2735 = vmatmul.mubr.msk.f32.vlgmr.msra.gmra.mxu1 %vm105_vm2, %v1892_v53  ;;  %vm2011_vm2 = vcmask 31744  }
 0x896   :  { %v1977_v0 = vpop.f32.mrf.mxu1 }
 0x897   :  { %v1978_v16 = vadd.f32 %v2063_v54, %v1977_v0 }
 0x898   :  { %v2736_v55 = vpop.f32.mrf.mxu1 }
 0x899   :  { %v1995_v56 = vsel %vm1994_vm3, %v1978_v16, -inf  ;;  %v1982_v57 = vsel %vm1981_vm4, %v1978_v16, -inf }
 0x89a   :  { %1996 = vmax.xlane.f32.xlu0 %v1995_v56  ;;  %1983 = vmax.xlane.f32.xlu1 %v1982_v57 }
 0x923   :  { %v1997_v58 = vpop.xlane.xlu0 %1996  ;;  %v1984_v59 = vpop.xlane.xlu1 %1983 }
 0x924   :  { %v1998_v3 = vsub.f32 %v1978_v16, %v1997_v58  ;;  %v1985_v5 = vsub.f32 %v1978_v16, %v1984_v59 }
 0x926   :  { %v1999_v7 = vmul.f32 1.442695, %v1998_v3  ;;  %v1986_v9 = vmul.f32 1.442695, %v1985_v5 }
 0x928   :  { %2778 = vpow2.f32 %v1999_v7 }
 0x929   :  { %2780 = vpow2.f32 %v1986_v9 }
 0x935   :  { %v2779_v10 = vpop.eup %2778 }
 0x936   :  { %v2781_v11 = vpop.eup %2780  ;;  %2002 = vrot.lane.b32.xlu0 %v2779_v10, %s2822_s8 }
 0x937   :  { %v1988_v13 = vsel %vm1981_vm4, %v2781_v11, 0.0 }
 0x938   :  { %1989 = vadd.xlane.f32.xlu1 %v1988_v13 }
 0x9a8   :  { %v2003_v14 = vpop.permute.xlu0 %2002 }
 0x9a9   :  { %v2005_v17 = vsel %vm1981_vm4, %v2003_v14, 0.0 }
 0x9aa   :  { %2006 = vadd.xlane.f32.xlu1 %v2005_v17 }
 0x9c1   :  { %v1990_v18 = vpop.xlane.xlu1 %1989 }
 0x9c2   :  { %2782 = vlog2.f32 %v1990_v18 }
 0x9cf   :  { %v2783_v21 = vpop.eup %2782 }
 0x9d0   :  { %v1992_v22 = vmul.f32 0.6931472, %v2783_v21 }
 0x9d2   :  { %v1993_v27 = vsub.f32 %v1985_v5, %v1992_v22 }
 0xa33   :  { %v2007_v20 = vpop.xlane.xlu1 %2006 }
 0xa34   :  { %2784 = vlog2.f32 %v2007_v20 }
 0xa41   :  { %v2785_v23 = vpop.eup %2784 }
 0xa42   :  { %v2009_v26 = vmul.f32 0.6931472, %v2785_v23 }
 0xa44   :  { %v2010_v1 = vsub.f32 %v1998_v3, %v2009_v26 }
 0xa46   :  { %v2012_v28 = vsel %vm2011_vm2, %v1993_v27, %v2010_v1 }
 0xa47   :  { %2014 = vst.msk [vmem:[%s3578_s11] sm:$0x3] %vm2013_vm5, %v2012_v28 }
 0xa48   :  { %2019 = vsyncpa [#allocation3], 1 }

</bundles_post_ra>
